<compile_context>
chip_gen: v7x
topology: tpu7x:2x2x1
jax: 0.10.0
libtpu: 0.0.40
codegen_flags: <defaults>
</compile_context>

<pallas_src>
import jax
import jax.numpy as jnp
from jax.experimental import pallas as pl
from jax.experimental.pallas import tpu as pltpu


def _round_up(x, m):
    return (x + m - 1) // m * m


# ----------------------------------------------------------------------------
# 3x3 conv (padding=1, no bias) with fused per-channel BN statistics
# ----------------------------------------------------------------------------

def _conv3x3_call(x_bf16, w_prep):
    """x_bf16: (B, H, W, C) bf16;  w_prep: (9, C, Coutp) bf16, Coutp % 128 == 0.

    Returns y (B, H*W, Coutp) f32, chan_sum (1, Coutp) f32, chan_ssq (1, Coutp) f32.
    """
    B, H, W, C = x_bf16.shape
    Coutp = w_prep.shape[-1]
    HW = H * W
    HW2 = (H + 2) * W

    xp = jnp.pad(x_bf16, ((0, 0), (1, 1), (1, 1), (0, 0)))  # (B, H+2, W+2, C)
    # Three width-shifted, height-padded views flattened over (H+2, W): a dy row
    # shift becomes a contiguous offset of dy*W rows -> in-kernel pl.ds slices,
    # no (M, 9C) im2col tensor in HBM.
    xs = [xp[:, :, dx:dx + W, :].reshape(B, HW2, C) for dx in range(3)]

    def kernel(x0_ref, x1_ref, x2_ref, w_ref, y_ref, sum_ref, ssq_ref):
        @pl.when(pl.program_id(0) == 0)
        def _():
            sum_ref[...] = jnp.zeros_like(sum_ref)
            ssq_ref[...] = jnp.zeros_like(ssq_ref)

        first = True
        for dy in range(3):
            for dx, xr in enumerate((x0_ref, x1_ref, x2_ref)):
                patch = xr[pl.ds(dy * W, HW), :]                 # (HW, C) bf16
                contrib = jnp.dot(patch, w_ref[3 * dy + dx],
                                  preferred_element_type=jnp.float32)
                if first:
                    y_ref[...] = contrib
                    first = False
                else:
                    y_ref[...] += contrib

        y = y_ref[...]
        sum_ref[...] += jnp.sum(y, axis=0, keepdims=True)
        ssq_ref[...] += jnp.sum(y * y, axis=0, keepdims=True)

    act_spec = pl.BlockSpec((None, HW2, C), lambda b: (b, 0, 0))
    return pl.pallas_call(
        kernel,
        out_shape=(jax.ShapeDtypeStruct((B, HW, Coutp), jnp.float32),
                   jax.ShapeDtypeStruct((1, Coutp), jnp.float32),
                   jax.ShapeDtypeStruct((1, Coutp), jnp.float32)),
        grid_spec=pltpu.PrefetchScalarGridSpec(
            num_scalar_prefetch=0,
            grid=(B,),
            in_specs=[act_spec, act_spec, act_spec,
                      pl.BlockSpec((9, C, Coutp), lambda b: (0, 0, 0))],
            out_specs=(pl.BlockSpec((None, HW, Coutp), lambda b: (b, 0, 0)),
                       pl.BlockSpec((1, Coutp), lambda b: (0, 0)),
                       pl.BlockSpec((1, Coutp), lambda b: (0, 0)))),
        compiler_params=pltpu.CompilerParams(
            dimension_semantics=("arbitrary",)),   # sum/ssq accumulate across B
    )(xs[0], xs[1], xs[2], w_prep)


# ----------------------------------------------------------------------------
# BatchNorm (training-mode batch stats, weight=1, bias=0, eps=1e-5) + ReLU
# ----------------------------------------------------------------------------

def _bn_relu_call(y, chan_sum, chan_ssq, count):
    """y: (M, Cp) f32; stats (1, Cp) f32; returns (M, Cp) bf16.  M-tiled apply."""
    M, Cp = y.shape
    TM = 256 if M % 256 == 0 else M
    inv = 1.0 / float(count)

    def kernel(y_ref, s_ref, q_ref, o_ref):
        mean = s_ref[...] * inv
        var = q_ref[...] * inv - mean * mean            # biased variance
        scale = jax.lax.rsqrt(var + 1e-5)
        o_ref[...] = jnp.maximum((y_ref[...] - mean) * scale,
                                 0.0).astype(o_ref.dtype)

    return pl.pallas_call(
        kernel,
        out_shape=jax.ShapeDtypeStruct((M, Cp), jnp.bfloat16),
        grid_spec=pltpu.PrefetchScalarGridSpec(
            num_scalar_prefetch=0,
            grid=(M // TM,),
            in_specs=[pl.BlockSpec((TM, Cp), lambda i: (i, 0)),
                      pl.BlockSpec((1, Cp), lambda i: (0, 0)),
                      pl.BlockSpec((1, Cp), lambda i: (0, 0))],
            out_specs=pl.BlockSpec((TM, Cp), lambda i: (i, 0))),
        compiler_params=pltpu.CompilerParams(
            dimension_semantics=("parallel",)),
    )(y, chan_sum, chan_ssq)


def conv3x3_bn_relu(x, w_prep, cout):
    """x: (B, H, W, C) bf16 -> (B, H, W, cout) bf16."""
    B, H, W, _ = x.shape
    coutp = w_prep.shape[-1]
    y, s, ss = _conv3x3_call(x, w_prep)
    ybn = _bn_relu_call(y.reshape(B * H * W, coutp), s, ss, count=B * H * W)
    return ybn.reshape(B, H, W, coutp)[..., :cout]


# ----------------------------------------------------------------------------
# Matmul with fused bias epilogue (bf16 operands, f32 accumulation)
# ----------------------------------------------------------------------------

def _matmul_bias_kernel(x_ref, w_ref, b_ref, o_ref, acc_ref):
    @pl.when(pl.program_id(1) == 0)
    def _():
        acc_ref[...] = jnp.zeros_like(acc_ref)

    acc_ref[...] += jnp.dot(x_ref[...], w_ref[...],
                            preferred_element_type=jnp.float32)

    @pl.when(pl.program_id(1) == pl.num_programs(1) - 1)
    def _():
        o_ref[...] = (acc_ref[...] + b_ref[...]).astype(o_ref.dtype)


def pallas_matmul_bias(x, w, b, out_dtype=jnp.bfloat16):
    """(M, K) bf16 @ (K, Np) bf16 + b(1, Np) f32 -> (M, Np) out_dtype.  Np % 128 == 0."""
    M, K = x.shape
    _, Np = w.shape
    TM = min(256, _round_up(M, 8))
    Mp = _round_up(M, TM)
    TK = K if K <= 512 else 512        # whole-K reduction when it fits (deep layers)
    Kp = _round_up(K, TK)
    if (Mp, Kp) != (M, K):
        x = jnp.pad(x, ((0, Mp - M), (0, Kp - K)))
    if Kp != K:
        w = jnp.pad(w, ((0, Kp - K), (0, 0)))
    out = pl.pallas_call(
        _matmul_bias_kernel,
        out_shape=jax.ShapeDtypeStruct((Mp, Np), out_dtype),
        grid_spec=pltpu.PrefetchScalarGridSpec(
            num_scalar_prefetch=0,
            grid=(Mp // TM, Kp // TK),
            in_specs=[pl.BlockSpec((TM, TK), lambda i, k: (i, k)),
                      pl.BlockSpec((TK, Np), lambda i, k: (k, 0)),
                      pl.BlockSpec((1, Np), lambda i, k: (0, 0))],
            out_specs=pl.BlockSpec((TM, Np), lambda i, k: (i, 0)),
            scratch_shapes=[pltpu.VMEM((TM, Np), jnp.float32)]),
        compiler_params=pltpu.CompilerParams(
            dimension_semantics=("parallel", "arbitrary")),
    )(x, w, b)
    return out[:M]


def conv_transpose2x2(x, w_packed, b_tiled, cout, coutp):
    """ConvTranspose2d(k=2, s=2).  x: (B, H, W, Cin) bf16;
    w_packed: (Cin, 4*coutp) bf16 (tap-major, per-tap zero-padded to coutp)."""
    B, H, W, C = x.shape
    y = pallas_matmul_bias(x.reshape(B * H * W, C), w_packed, b_tiled)
    y = y.reshape(B, H, W, 2, 2, coutp)
    y = jnp.transpose(y, (0, 1, 3, 2, 4, 5)).reshape(B, 2 * H, 2 * W, coutp)
    return y[..., :cout]


# ----------------------------------------------------------------------------
# MaxPool2d(2) - single tiled kernel, input read once
# ----------------------------------------------------------------------------

def pallas_maxpool2(x):
    """x: (B, H, W, C) bf16 -> (B, H//2, W//2, C) bf16."""
    B, H, W, C = x.shape
    Ho, Wo = H // 2, W // 2
    # Free reshape: column pairs become 2*C contiguous lanes.
    x2 = x.reshape(B * H, Wo, 2 * C)

    def kernel(x_ref, o_ref):
        a = x_ref[0, :, :C]     # even columns, even row
        b = x_ref[0, :, C:]     # odd  columns, even row
        c = x_ref[1, :, :C]     # even columns, odd  row
        d = x_ref[1, :, C:]     # odd  columns, odd  row
        o_ref[...] = jnp.maximum(jnp.maximum(a, b), jnp.maximum(c, d))

    out = pl.pallas_call(
        kernel,
        out_shape=jax.ShapeDtypeStruct((B * Ho, Wo, C), x.dtype),
        grid_spec=pltpu.PrefetchScalarGridSpec(
            num_scalar_prefetch=0,
            grid=(B * Ho,),
            in_specs=[pl.BlockSpec((2, Wo, 2 * C), lambda i: (i, 0, 0))],
            out_specs=pl.BlockSpec((None, Wo, C), lambda i: (i, 0, 0))),
        compiler_params=pltpu.CompilerParams(
            dimension_semantics=("parallel",)),
    )(x2)
    return out.reshape(B, Ho, Wo, C)


# ----------------------------------------------------------------------------
# Tiny 1x1 heads (N=3): plain XLA - kernel launch overhead exceeds the work.
# ----------------------------------------------------------------------------

def conv1x1_head(x, p):
    y = jnp.einsum('bhwc,cn->bhwn', x.astype(jnp.float32), p['w']) + p['b']
    return y


def get_2d_positional_encoding(B, H, W):
    # TODO(synk): original get_2d_positional_encoding not provided; using 2
    # normalized coordinate channels in [-1, 1].
    ys = jnp.linspace(-1.0, 1.0, H)
    xs = jnp.linspace(-1.0, 1.0, W)
    yy = jnp.broadcast_to(ys[:, None], (H, W))
    xx = jnp.broadcast_to(xs[None, :], (H, W))
    pe = jnp.stack([yy, xx], axis=-1)
    return jnp.broadcast_to(pe[None], (B, H, W, 2)).astype(jnp.float32)


# ----------------------------------------------------------------------------
# Parameters (initialized + prepared once: reshape / pad N to 128 / cast bf16)
# ----------------------------------------------------------------------------

def _kaiming_conv(key, kh, kw, cin, cout):
    std = (2.0 / (cin * kh * kw)) ** 0.5
    return std * jax.random.normal(key, (kh, kw, cin, cout), jnp.float32)


def _kaiming_convT(key, cin, cout):
    # PyTorch ConvTranspose2d weight (Cin, Cout, 2, 2): fan_in = Cout * 4
    std = (2.0 / (cout * 4)) ** 0.5
    return std * jax.random.normal(key, (2, 2, cin, cout), jnp.float32)


def _prep_conv3x3(w):
    _, _, cin, cout = w.shape
    coutp = _round_up(cout, 128)
    wp = jnp.pad(w, ((0, 0), (0, 0), (0, 0), (0, coutp - cout)))
    return wp.reshape(9, cin, coutp).astype(jnp.bfloat16)


def _prep_convT(w, b):
    _, _, cin, cout = w.shape
    coutp = _round_up(cout, 128)
    wp = jnp.pad(w, ((0, 0), (0, 0), (0, 0), (0, coutp - cout)))
    w_packed = jnp.transpose(wp, (2, 0, 1, 3)).reshape(cin, 4 * coutp)
    b_tiled = jnp.tile(jnp.pad(b, (0, coutp - cout)), 4).reshape(1, 4 * coutp)
    return w_packed.astype(jnp.bfloat16), b_tiled.astype(jnp.float32), cout, coutp


def init_params(key, num_channels=3, num_features=16, num_out=3):
    keys = iter(jax.random.split(key, 64))
    nf = num_features

    def enc(cin, cout):
        return {'w1': _prep_conv3x3(_kaiming_conv(next(keys), 3, 3, cin, cout)),
                'c1': cout,
                'w2': _prep_conv3x3(_kaiming_conv(next(keys), 3, 3, cout, cout)),
                'c2': cout}

    def dec(cin, cout):
        w_packed, b_tiled, co, cop = _prep_convT(
            _kaiming_convT(next(keys), cin, cout), jnp.zeros((cout,), jnp.float32))
        d = {'up_w': w_packed, 'up_b': b_tiled, 'up_cout': co, 'up_coutp': cop}
        d.update(enc(cin, cout))
        return d

    def head(cin, cout):
        std = (2.0 / cin) ** 0.5
        return {'w': std * jax.random.normal(next(keys), (cin, cout), jnp.float32),
                'b': jnp.zeros((cout,), jnp.float32)}

    return {
        'enc1': enc(num_channels + 2, nf),
        'enc2': enc(nf, nf * 2),
        'enc3': enc(nf * 2, nf * 4),
        'enc4': enc(nf * 4, nf * 8),
        # TODO(synk): FreqEdgeFusionBlock not provided; approximated as a
        # conv3x3-BN-ReLU x2 block with the same channel signature.
        'bottleneck': enc(nf * 8, nf * 16),
        'dec4': dec(nf * 16, nf * 8),
        'dec3': dec(nf * 8, nf * 4),
        'dec2': dec(nf * 4, nf * 2),
        'dec1': dec(nf * 2, nf),
        'out_full': head(nf, num_out),
        'out_half': head(nf * 2, num_out),
        'out_quarter': head(nf * 4, num_out),
    }


# ----------------------------------------------------------------------------
# Model forward
# ----------------------------------------------------------------------------

def unet_forward(params, x_nchw):
    x = jnp.transpose(x_nchw, (0, 2, 3, 1)).astype(jnp.float32)  # NCHW -> NHWC
    B, H, W, _ = x.shape
    pe = get_2d_positional_encoding(B, H, W)
    x = jnp.concatenate([x, pe], axis=-1).astype(jnp.bfloat16)

    def enc_block(x, p):
        x = conv3x3_bn_relu(x, p['w1'], p['c1'])
        return conv3x3_bn_relu(x, p['w2'], p['c2'])

    def dec_block(x, enc_feat, p):
        up = conv_transpose2x2(x, p['up_w'], p['up_b'],
                               p['up_cout'], p['up_coutp'])
        if up.shape[1:3] != enc_feat.shape[1:3]:
            dh = enc_feat.shape[1] - up.shape[1]
            dw = enc_feat.shape[2] - up.shape[2]
            enc_feat = enc_feat[:, dh // 2: enc_feat.shape[1] - dh + dh // 2,
                                dw // 2: enc_feat.shape[2] - dw + dw // 2, :]
        cat = jnp.concatenate([up, enc_feat], axis=-1)
        cat = conv3x3_bn_relu(cat, p['w1'], p['c1'])
        return conv3x3_bn_relu(cat, p['w2'], p['c2'])

    e1 = enc_block(x, params['enc1'])
    e2 = enc_block(pallas_maxpool2(e1), params['enc2'])
    e3 = enc_block(pallas_maxpool2(e2), params['enc3'])
    e4 = enc_block(pallas_maxpool2(e3), params['enc4'])
    b = enc_block(pallas_maxpool2(e4), params['bottleneck'])

    # TODO(synk): FreqEdgeFusionBlockV2 (skip1..skip4) not provided;
    # approximated as identity skip connections.
    d4 = dec_block(b, e4, params['dec4'])
    d3 = dec_block(d4, e3, params['dec3'])
    d2 = dec_block(d3, e2, params['dec2'])
    d1 = dec_block(d2, e1, params['dec1'])

    out_full = conv1x1_head(d1, params['out_full'])
    out_half = conv1x1_head(d2, params['out_half'])
    out_quarter = conv1x1_head(d3, params['out_quarter'])

    to_nchw = lambda t: jnp.transpose(t, (0, 3, 1, 2))
    return [to_nchw(out_full), to_nchw(out_half), to_nchw(out_quarter)]


# ----------------------------------------------------------------------------

if __name__ == "__main__":
    key = jax.random.PRNGKey(0)
    pkey, xkey = jax.random.split(key)

    NUM_CHANNELS, NUM_FEATURES, NUM_OUT = 3, 16, 3
    B, H, W = 2, 16, 16

    params = init_params(pkey, NUM_CHANNELS, NUM_FEATURES, NUM_OUT)
    x = jax.random.normal(xkey, (B, NUM_CHANNELS, H, W), jnp.float32)  # NCHW

    outs = unet_forward(params, x)
    outs = jax.block_until_ready(outs)

    assert outs[0].shape == (B, NUM_OUT, H, W)
    assert outs[1].shape == (B, NUM_OUT, H // 2, W // 2)
    assert outs[2].shape == (B, NUM_OUT, H // 4, W // 4)
    assert all(bool(jnp.isfinite(o).all()) for o in outs)
    print("KERNEL_OK")
</pallas_src>

<mosaic_0001>
module attributes {stable_mosaic.version = 11 : i64} {
  func.func @kernel(%arg0: i32, %arg1: memref<1x288x5xbf16, #tpu.memory_space<vmem>>, %arg2: memref<1x288x5xbf16, #tpu.memory_space<vmem>>, %arg3: memref<1x288x5xbf16, #tpu.memory_space<vmem>>, %arg4: memref<9x5x128xbf16, #tpu.memory_space<vmem>>, %arg5: memref<1x256x128xf32, #tpu.memory_space<vmem>>, %arg6: memref<1x128xf32, #tpu.memory_space<vmem>>, %arg7: memref<1x128xf32, #tpu.memory_space<vmem>>) attributes {dimension_semantics = [#tpu.dimension_semantics<arbitrary>], iteration_bounds = array<i64: 2>, scalar_prefetch = 0 : i64, scratch_operands = 0 : i64, tpu.core_type = #tpu.core_type<tc>, window_params = [{transform_indices = @transform_0, window_bounds = array<i64: 1, 288, 5>}, {transform_indices = @transform_1, window_bounds = array<i64: 1, 288, 5>}, {transform_indices = @transform_2, window_bounds = array<i64: 1, 288, 5>}, {pipeline_mode = #tpu.pipeline_mode<synchronous>, transform_indices = @transform_3, window_bounds = array<i64: 9, 5, 128>}, {transform_indices = @transform_4, window_bounds = array<i64: 1, 256, 128>}, {pipeline_mode = #tpu.pipeline_mode<synchronous>, transform_indices = @transform_5, window_bounds = array<i64: 1, 128>}, {pipeline_mode = #tpu.pipeline_mode<synchronous>, transform_indices = @transform_6, window_bounds = array<i64: 1, 128>}]} {
    %c0_i32 = arith.constant 0 : i32
    %0 = arith.cmpi eq, %arg0, %c0_i32 : i32
    %1 = arith.extui %0 : i1 to i32
    %c0_i32_0 = arith.constant 0 : i32
    %2 = arith.cmpi ne, %1, %c0_i32_0 : i32
    scf.if %2 {
      %cst_116 = arith.constant 0.000000e+00 : f32
      %112 = vector.broadcast %cst_116 : f32 to vector<1x128xf32>
      %c0_117 = arith.constant 0 : index
      %c0_118 = arith.constant 0 : index
      %113 = vector.load %arg6[%c0_117, %c0_118] : memref<1x128xf32, #tpu.memory_space<vmem>>, vector<1x128xf32>
      tpu.vector_store %arg6[%c0_117, %c0_118], %112 {strides = array<i32>} : memref<1x128xf32, #tpu.memory_space<vmem>>, vector<1x128xf32>,
      %cst_119 = arith.constant 0.000000e+00 : f32
      %114 = vector.broadcast %cst_119 : f32 to vector<1x128xf32>
      %c0_120 = arith.constant 0 : index
      %c0_121 = arith.constant 0 : index
      %115 = vector.load %arg7[%c0_120, %c0_121] : memref<1x128xf32, #tpu.memory_space<vmem>>, vector<1x128xf32>
      tpu.vector_store %arg7[%c0_120, %c0_121], %114 {strides = array<i32>} : memref<1x128xf32, #tpu.memory_space<vmem>>, vector<1x128xf32>,
    } else {
    }
    %c0 = arith.constant 0 : index
    %c0_1 = arith.constant 0 : index
    %c0_2 = arith.constant 0 : index
    %3 = vector.load %arg1[%c0, %c0_1, %c0_2] : memref<1x288x5xbf16, #tpu.memory_space<vmem>>, vector<1x256x5xbf16>
    %4 = vector.shape_cast %3 : vector<1x256x5xbf16> to vector<256x5xbf16>
    %c0_3 = arith.constant 0 : index
    %c0_4 = arith.constant 0 : index
    %c0_5 = arith.constant 0 : index
    %5 = vector.load %arg4[%c0_3, %c0_4, %c0_5] : memref<9x5x128xbf16, #tpu.memory_space<vmem>>, vector<1x5x128xbf16>
    %6 = vector.shape_cast %5 : vector<1x5x128xbf16> to vector<5x128xbf16>
    %cst = arith.constant dense<0.000000e+00> : vector<256x128xf32>
    %7 = tpu.matmul %4, %6, %cst {dimension_numbers = #tpu.dot_dimension_numbers<[1], [0], [0], [1], [0, 0, 1, 1], [], []>} : vector<256x5xbf16>, vector<5x128xbf16>, vector<256x128xf32> -> vector<256x128xf32>
    %c0_6 = arith.constant 0 : index
    %c0_7 = arith.constant 0 : index
    %c0_8 = arith.constant 0 : index
    %8 = vector.load %arg5[%c0_6, %c0_7, %c0_8] : memref<1x256x128xf32, #tpu.memory_space<vmem>>, vector<1x256x128xf32>
    %9 = vector.shape_cast %8 : vector<1x256x128xf32> to vector<256x128xf32>
    %10 = vector.shape_cast %7 : vector<256x128xf32> to vector<1x256x128xf32>
    tpu.vector_store %arg5[%c0_6, %c0_7, %c0_8], %10 {strides = array<i32>} : memref<1x256x128xf32, #tpu.memory_space<vmem>>, vector<1x256x128xf32>,
    %c0_9 = arith.constant 0 : index
    %c0_10 = arith.constant 0 : index
    %c0_11 = arith.constant 0 : index
    %11 = vector.load %arg2[%c0_9, %c0_10, %c0_11] : memref<1x288x5xbf16, #tpu.memory_space<vmem>>, vector<1x256x5xbf16>
    %12 = vector.shape_cast %11 : vector<1x256x5xbf16> to vector<256x5xbf16>
    %c1 = arith.constant 1 : index
    %c0_12 = arith.constant 0 : index
    %c0_13 = arith.constant 0 : index
    %13 = vector.load %arg4[%c1, %c0_12, %c0_13] : memref<9x5x128xbf16, #tpu.memory_space<vmem>>, vector<1x5x128xbf16>
    %14 = vector.shape_cast %13 : vector<1x5x128xbf16> to vector<5x128xbf16>
    %cst_14 = arith.constant dense<0.000000e+00> : vector<256x128xf32>
    %15 = tpu.matmul %12, %14, %cst_14 {dimension_numbers = #tpu.dot_dimension_numbers<[1], [0], [0], [1], [0, 0, 1, 1], [], []>} : vector<256x5xbf16>, vector<5x128xbf16>, vector<256x128xf32> -> vector<256x128xf32>
    %c0_15 = arith.constant 0 : index
    %c0_16 = arith.constant 0 : index
    %c0_17 = arith.constant 0 : index
    %16 = vector.load %arg5[%c0_15, %c0_16, %c0_17] : memref<1x256x128xf32, #tpu.memory_space<vmem>>, vector<1x256x128xf32>
    %17 = vector.shape_cast %16 : vector<1x256x128xf32> to vector<256x128xf32>
    %18 = arith.addf %17, %15 : vector<256x128xf32>
    %c0_18 = arith.constant 0 : index
    %c0_19 = arith.constant 0 : index
    %c0_20 = arith.constant 0 : index
    %19 = vector.load %arg5[%c0_18, %c0_19, %c0_20] : memref<1x256x128xf32, #tpu.memory_space<vmem>>, vector<1x256x128xf32>
    %20 = vector.shape_cast %19 : vector<1x256x128xf32> to vector<256x128xf32>
    %21 = vector.shape_cast %18 : vector<256x128xf32> to vector<1x256x128xf32>
    tpu.vector_store %arg5[%c0_18, %c0_19, %c0_20], %21 {strides = array<i32>} : memref<1x256x128xf32, #tpu.memory_space<vmem>>, vector<1x256x128xf32>,
    %c0_21 = arith.constant 0 : index
    %c0_22 = arith.constant 0 : index
    %c0_23 = arith.constant 0 : index
    %22 = vector.load %arg3[%c0_21, %c0_22, %c0_23] : memref<1x288x5xbf16, #tpu.memory_space<vmem>>, vector<1x256x5xbf16>
    %23 = vector.shape_cast %22 : vector<1x256x5xbf16> to vector<256x5xbf16>
    %c2 = arith.constant 2 : index
    %c0_24 = arith.constant 0 : index
    %c0_25 = arith.constant 0 : index
    %24 = vector.load %arg4[%c2, %c0_24, %c0_25] : memref<9x5x128xbf16, #tpu.memory_space<vmem>>, vector<1x5x128xbf16>
    %25 = vector.shape_cast %24 : vector<1x5x128xbf16> to vector<5x128xbf16>
    %cst_26 = arith.constant dense<0.000000e+00> : vector<256x128xf32>
    %26 = tpu.matmul %23, %25, %cst_26 {dimension_numbers = #tpu.dot_dimension_numbers<[1], [0], [0], [1], [0, 0, 1, 1], [], []>} : vector<256x5xbf16>, vector<5x128xbf16>, vector<256x128xf32> -> vector<256x128xf32>
    %c0_27 = arith.constant 0 : index
    %c0_28 = arith.constant 0 : index
    %c0_29 = arith.constant 0 : index
    %27 = vector.load %arg5[%c0_27, %c0_28, %c0_29] : memref<1x256x128xf32, #tpu.memory_space<vmem>>, vector<1x256x128xf32>
    %28 = vector.shape_cast %27 : vector<1x256x128xf32> to vector<256x128xf32>
    %29 = arith.addf %28, %26 : vector<256x128xf32>
    %c0_30 = arith.constant 0 : index
    %c0_31 = arith.constant 0 : index
    %c0_32 = arith.constant 0 : index
    %30 = vector.load %arg5[%c0_30, %c0_31, %c0_32] : memref<1x256x128xf32, #tpu.memory_space<vmem>>, vector<1x256x128xf32>
    %31 = vector.shape_cast %30 : vector<1x256x128xf32> to vector<256x128xf32>
    %32 = vector.shape_cast %29 : vector<256x128xf32> to vector<1x256x128xf32>
    tpu.vector_store %arg5[%c0_30, %c0_31, %c0_32], %32 {strides = array<i32>} : memref<1x256x128xf32, #tpu.memory_space<vmem>>, vector<1x256x128xf32>,
    %c0_33 = arith.constant 0 : index
    %c16 = arith.constant 16 : index
    %c0_34 = arith.constant 0 : index
    %33 = vector.load %arg1[%c0_33, %c16, %c0_34] : memref<1x288x5xbf16, #tpu.memory_space<vmem>>, vector<1x256x5xbf16>
    %34 = vector.shape_cast %33 : vector<1x256x5xbf16> to vector<256x5xbf16>
    %c3 = arith.constant 3 : index
    %c0_35 = arith.constant 0 : index
    %c0_36 = arith.constant 0 : index
    %35 = vector.load %arg4[%c3, %c0_35, %c0_36] : memref<9x5x128xbf16, #tpu.memory_space<vmem>>, vector<1x5x128xbf16>
    %36 = vector.shape_cast %35 : vector<1x5x128xbf16> to vector<5x128xbf16>
    %cst_37 = arith.constant dense<0.000000e+00> : vector<256x128xf32>
    %37 = tpu.matmul %34, %36, %cst_37 {dimension_numbers = #tpu.dot_dimension_numbers<[1], [0], [0], [1], [0, 0, 1, 1], [], []>} : vector<256x5xbf16>, vector<5x128xbf16>, vector<256x128xf32> -> vector<256x128xf32>
    %c0_38 = arith.constant 0 : index
    %c0_39 = arith.constant 0 : index
    %c0_40 = arith.constant 0 : index
    %38 = vector.load %arg5[%c0_38, %c0_39, %c0_40] : memref<1x256x128xf32, #tpu.memory_space<vmem>>, vector<1x256x128xf32>
    %39 = vector.shape_cast %38 : vector<1x256x128xf32> to vector<256x128xf32>
    %40 = arith.addf %39, %37 : vector<256x128xf32>
    %c0_41 = arith.constant 0 : index
    %c0_42 = arith.constant 0 : index
    %c0_43 = arith.constant 0 : index
    %41 = vector.load %arg5[%c0_41, %c0_42, %c0_43] : memref<1x256x128xf32, #tpu.memory_space<vmem>>, vector<1x256x128xf32>
    %42 = vector.shape_cast %41 : vector<1x256x128xf32> to vector<256x128xf32>
    %43 = vector.shape_cast %40 : vector<256x128xf32> to vector<1x256x128xf32>
    tpu.vector_store %arg5[%c0_41, %c0_42, %c0_43], %43 {strides = array<i32>} : memref<1x256x128xf32, #tpu.memory_space<vmem>>, vector<1x256x128xf32>,
    %c0_44 = arith.constant 0 : index
    %c16_45 = arith.constant 16 : index
    %c0_46 = arith.constant 0 : index
    %44 = vector.load %arg2[%c0_44, %c16_45, %c0_46] : memref<1x288x5xbf16, #tpu.memory_space<vmem>>, vector<1x256x5xbf16>
    %45 = vector.shape_cast %44 : vector<1x256x5xbf16> to vector<256x5xbf16>
    %c4 = arith.constant 4 : index
    %c0_47 = arith.constant 0 : index
    %c0_48 = arith.constant 0 : index
    %46 = vector.load %arg4[%c4, %c0_47, %c0_48] : memref<9x5x128xbf16, #tpu.memory_space<vmem>>, vector<1x5x128xbf16>
    %47 = vector.shape_cast %46 : vector<1x5x128xbf16> to vector<5x128xbf16>
    %cst_49 = arith.constant dense<0.000000e+00> : vector<256x128xf32>
    %48 = tpu.matmul %45, %47, %cst_49 {dimension_numbers = #tpu.dot_dimension_numbers<[1], [0], [0], [1], [0, 0, 1, 1], [], []>} : vector<256x5xbf16>, vector<5x128xbf16>, vector<256x128xf32> -> vector<256x128xf32>
    %c0_50 = arith.constant 0 : index
    %c0_51 = arith.constant 0 : index
    %c0_52 = arith.constant 0 : index
    %49 = vector.load %arg5[%c0_50, %c0_51, %c0_52] : memref<1x256x128xf32, #tpu.memory_space<vmem>>, vector<1x256x128xf32>
    %50 = vector.shape_cast %49 : vector<1x256x128xf32> to vector<256x128xf32>
    %51 = arith.addf %50, %48 : vector<256x128xf32>
    %c0_53 = arith.constant 0 : index
    %c0_54 = arith.constant 0 : index
    %c0_55 = arith.constant 0 : index
    %52 = vector.load %arg5[%c0_53, %c0_54, %c0_55] : memref<1x256x128xf32, #tpu.memory_space<vmem>>, vector<1x256x128xf32>
    %53 = vector.shape_cast %52 : vector<1x256x128xf32> to vector<256x128xf32>
    %54 = vector.shape_cast %51 : vector<256x128xf32> to vector<1x256x128xf32>
    tpu.vector_store %arg5[%c0_53, %c0_54, %c0_55], %54 {strides = array<i32>} : memref<1x256x128xf32, #tpu.memory_space<vmem>>, vector<1x256x128xf32>,
    %c0_56 = arith.constant 0 : index
    %c16_57 = arith.constant 16 : index
    %c0_58 = arith.constant 0 : index
    %55 = vector.load %arg3[%c0_56, %c16_57, %c0_58] : memref<1x288x5xbf16, #tpu.memory_space<vmem>>, vector<1x256x5xbf16>
    %56 = vector.shape_cast %55 : vector<1x256x5xbf16> to vector<256x5xbf16>
    %c5 = arith.constant 5 : index
    %c0_59 = arith.constant 0 : index
    %c0_60 = arith.constant 0 : index
    %57 = vector.load %arg4[%c5, %c0_59, %c0_60] : memref<9x5x128xbf16, #tpu.memory_space<vmem>>, vector<1x5x128xbf16>
    %58 = vector.shape_cast %57 : vector<1x5x128xbf16> to vector<5x128xbf16>
    %cst_61 = arith.constant dense<0.000000e+00> : vector<256x128xf32>
    %59 = tpu.matmul %56, %58, %cst_61 {dimension_numbers = #tpu.dot_dimension_numbers<[1], [0], [0], [1], [0, 0, 1, 1], [], []>} : vector<256x5xbf16>, vector<5x128xbf16>, vector<256x128xf32> -> vector<256x128xf32>
    %c0_62 = arith.constant 0 : index
    %c0_63 = arith.constant 0 : index
    %c0_64 = arith.constant 0 : index
    %60 = vector.load %arg5[%c0_62, %c0_63, %c0_64] : memref<1x256x128xf32, #tpu.memory_space<vmem>>, vector<1x256x128xf32>
    %61 = vector.shape_cast %60 : vector<1x256x128xf32> to vector<256x128xf32>
    %62 = arith.addf %61, %59 : vector<256x128xf32>
    %c0_65 = arith.constant 0 : index
    %c0_66 = arith.constant 0 : index
    %c0_67 = arith.constant 0 : index
    %63 = vector.load %arg5[%c0_65, %c0_66, %c0_67] : memref<1x256x128xf32, #tpu.memory_space<vmem>>, vector<1x256x128xf32>
    %64 = vector.shape_cast %63 : vector<1x256x128xf32> to vector<256x128xf32>
    %65 = vector.shape_cast %62 : vector<256x128xf32> to vector<1x256x128xf32>
    tpu.vector_store %arg5[%c0_65, %c0_66, %c0_67], %65 {strides = array<i32>} : memref<1x256x128xf32, #tpu.memory_space<vmem>>, vector<1x256x128xf32>,
    %c0_68 = arith.constant 0 : index
    %c32 = arith.constant 32 : index
    %c0_69 = arith.constant 0 : index
    %66 = vector.load %arg1[%c0_68, %c32, %c0_69] : memref<1x288x5xbf16, #tpu.memory_space<vmem>>, vector<1x256x5xbf16>
    %67 = vector.shape_cast %66 : vector<1x256x5xbf16> to vector<256x5xbf16>
    %c6 = arith.constant 6 : index
    %c0_70 = arith.constant 0 : index
    %c0_71 = arith.constant 0 : index
    %68 = vector.load %arg4[%c6, %c0_70, %c0_71] : memref<9x5x128xbf16, #tpu.memory_space<vmem>>, vector<1x5x128xbf16>
    %69 = vector.shape_cast %68 : vector<1x5x128xbf16> to vector<5x128xbf16>
    %cst_72 = arith.constant dense<0.000000e+00> : vector<256x128xf32>
    %70 = tpu.matmul %67, %69, %cst_72 {dimension_numbers = #tpu.dot_dimension_numbers<[1], [0], [0], [1], [0, 0, 1, 1], [], []>} : vector<256x5xbf16>, vector<5x128xbf16>, vector<256x128xf32> -> vector<256x128xf32>
    %c0_73 = arith.constant 0 : index
    %c0_74 = arith.constant 0 : index
    %c0_75 = arith.constant 0 : index
    %71 = vector.load %arg5[%c0_73, %c0_74, %c0_75] : memref<1x256x128xf32, #tpu.memory_space<vmem>>, vector<1x256x128xf32>
    %72 = vector.shape_cast %71 : vector<1x256x128xf32> to vector<256x128xf32>
    %73 = arith.addf %72, %70 : vector<256x128xf32>
    %c0_76 = arith.constant 0 : index
    %c0_77 = arith.constant 0 : index
    %c0_78 = arith.constant 0 : index
    %74 = vector.load %arg5[%c0_76, %c0_77, %c0_78] : memref<1x256x128xf32, #tpu.memory_space<vmem>>, vector<1x256x128xf32>
    %75 = vector.shape_cast %74 : vector<1x256x128xf32> to vector<256x128xf32>
    %76 = vector.shape_cast %73 : vector<256x128xf32> to vector<1x256x128xf32>
    tpu.vector_store %arg5[%c0_76, %c0_77, %c0_78], %76 {strides = array<i32>} : memref<1x256x128xf32, #tpu.memory_space<vmem>>, vector<1x256x128xf32>,
    %c0_79 = arith.constant 0 : index
    %c32_80 = arith.constant 32 : index
    %c0_81 = arith.constant 0 : index
    %77 = vector.load %arg2[%c0_79, %c32_80, %c0_81] : memref<1x288x5xbf16, #tpu.memory_space<vmem>>, vector<1x256x5xbf16>
    %78 = vector.shape_cast %77 : vector<1x256x5xbf16> to vector<256x5xbf16>
    %c7 = arith.constant 7 : index
    %c0_82 = arith.constant 0 : index
    %c0_83 = arith.constant 0 : index
    %79 = vector.load %arg4[%c7, %c0_82, %c0_83] : memref<9x5x128xbf16, #tpu.memory_space<vmem>>, vector<1x5x128xbf16>
    %80 = vector.shape_cast %79 : vector<1x5x128xbf16> to vector<5x128xbf16>
    %cst_84 = arith.constant dense<0.000000e+00> : vector<256x128xf32>
    %81 = tpu.matmul %78, %80, %cst_84 {dimension_numbers = #tpu.dot_dimension_numbers<[1], [0], [0], [1], [0, 0, 1, 1], [], []>} : vector<256x5xbf16>, vector<5x128xbf16>, vector<256x128xf32> -> vector<256x128xf32>
    %c0_85 = arith.constant 0 : index
    %c0_86 = arith.constant 0 : index
    %c0_87 = arith.constant 0 : index
    %82 = vector.load %arg5[%c0_85, %c0_86, %c0_87] : memref<1x256x128xf32, #tpu.memory_space<vmem>>, vector<1x256x128xf32>
    %83 = vector.shape_cast %82 : vector<1x256x128xf32> to vector<256x128xf32>
    %84 = arith.addf %83, %81 : vector<256x128xf32>
    %c0_88 = arith.constant 0 : index
    %c0_89 = arith.constant 0 : index
    %c0_90 = arith.constant 0 : index
    %85 = vector.load %arg5[%c0_88, %c0_89, %c0_90] : memref<1x256x128xf32, #tpu.memory_space<vmem>>, vector<1x256x128xf32>
    %86 = vector.shape_cast %85 : vector<1x256x128xf32> to vector<256x128xf32>
    %87 = vector.shape_cast %84 : vector<256x128xf32> to vector<1x256x128xf32>
    tpu.vector_store %arg5[%c0_88, %c0_89, %c0_90], %87 {strides = array<i32>} : memref<1x256x128xf32, #tpu.memory_space<vmem>>, vector<1x256x128xf32>,
    %c0_91 = arith.constant 0 : index
    %c32_92 = arith.constant 32 : index
    %c0_93 = arith.constant 0 : index
    %88 = vector.load %arg3[%c0_91, %c32_92, %c0_93] : memref<1x288x5xbf16, #tpu.memory_space<vmem>>, vector<1x256x5xbf16>
    %89 = vector.shape_cast %88 : vector<1x256x5xbf16> to vector<256x5xbf16>
    %c8 = arith.constant 8 : index
    %c0_94 = arith.constant 0 : index
    %c0_95 = arith.constant 0 : index
    %90 = vector.load %arg4[%c8, %c0_94, %c0_95] : memref<9x5x128xbf16, #tpu.memory_space<vmem>>, vector<1x5x128xbf16>
    %91 = vector.shape_cast %90 : vector<1x5x128xbf16> to vector<5x128xbf16>
    %cst_96 = arith.constant dense<0.000000e+00> : vector<256x128xf32>
    %92 = tpu.matmul %89, %91, %cst_96 {dimension_numbers = #tpu.dot_dimension_numbers<[1], [0], [0], [1], [0, 0, 1, 1], [], []>} : vector<256x5xbf16>, vector<5x128xbf16>, vector<256x128xf32> -> vector<256x128xf32>
    %c0_97 = arith.constant 0 : index
    %c0_98 = arith.constant 0 : index
    %c0_99 = arith.constant 0 : index
    %93 = vector.load %arg5[%c0_97, %c0_98, %c0_99] : memref<1x256x128xf32, #tpu.memory_space<vmem>>, vector<1x256x128xf32>
    %94 = vector.shape_cast %93 : vector<1x256x128xf32> to vector<256x128xf32>
    %95 = arith.addf %94, %92 : vector<256x128xf32>
    %c0_100 = arith.constant 0 : index
    %c0_101 = arith.constant 0 : index
    %c0_102 = arith.constant 0 : index
    %96 = vector.load %arg5[%c0_100, %c0_101, %c0_102] : memref<1x256x128xf32, #tpu.memory_space<vmem>>, vector<1x256x128xf32>
    %97 = vector.shape_cast %96 : vector<1x256x128xf32> to vector<256x128xf32>
    %98 = vector.shape_cast %95 : vector<256x128xf32> to vector<1x256x128xf32>
    tpu.vector_store %arg5[%c0_100, %c0_101, %c0_102], %98 {strides = array<i32>} : memref<1x256x128xf32, #tpu.memory_space<vmem>>, vector<1x256x128xf32>,
    %c0_103 = arith.constant 0 : index
    %c0_104 = arith.constant 0 : index
    %c0_105 = arith.constant 0 : index
    %99 = vector.load %arg5[%c0_103, %c0_104, %c0_105] : memref<1x256x128xf32, #tpu.memory_space<vmem>>, vector<1x256x128xf32>
    %100 = vector.shape_cast %99 : vector<1x256x128xf32> to vector<256x128xf32>
    %c0_106 = arith.constant 0 : index
    %c0_107 = arith.constant 0 : index
    %101 = vector.load %arg6[%c0_106, %c0_107] : memref<1x128xf32, #tpu.memory_space<vmem>>, vector<1x128xf32>
    %cst_108 = arith.constant dense<0.000000e+00> : vector<128xf32>
    %102 = vector.multi_reduction <add>, %100, %cst_108 [0] : vector<256x128xf32> to vector<128xf32>
    %103 = vector.shape_cast %102 : vector<128xf32> to vector<1x128xf32>
    %104 = arith.addf %101, %103 : vector<1x128xf32>
    %c0_109 = arith.constant 0 : index
    %c0_110 = arith.constant 0 : index
    %105 = vector.load %arg6[%c0_109, %c0_110] : memref<1x128xf32, #tpu.memory_space<vmem>>, vector<1x128xf32>
    tpu.vector_store %arg6[%c0_109, %c0_110], %104 {strides = array<i32>} : memref<1x128xf32, #tpu.memory_space<vmem>>, vector<1x128xf32>,
    %c0_111 = arith.constant 0 : index
    %c0_112 = arith.constant 0 : index
    %106 = vector.load %arg7[%c0_111, %c0_112] : memref<1x128xf32, #tpu.memory_space<vmem>>, vector<1x128xf32>
    %107 = arith.mulf %100, %100 : vector<256x128xf32>
    %cst_113 = arith.constant dense<0.000000e+00> : vector<128xf32>
    %108 = vector.multi_reduction <add>, %107, %cst_113 [0] : vector<256x128xf32> to vector<128xf32>
    %109 = vector.shape_cast %108 : vector<128xf32> to vector<1x128xf32>
    %110 = arith.addf %106, %109 : vector<1x128xf32>
    %c0_114 = arith.constant 0 : index
    %c0_115 = arith.constant 0 : index
    %111 = vector.load %arg7[%c0_114, %c0_115] : memref<1x128xf32, #tpu.memory_space<vmem>>, vector<1x128xf32>
    tpu.vector_store %arg7[%c0_114, %c0_115], %110 {strides = array<i32>} : memref<1x128xf32, #tpu.memory_space<vmem>>, vector<1x128xf32>,
    return
  }
  func.func @transform_0(%arg0: i32) -> (i32, i32, i32) {
    %c0_i32 = arith.constant 0 : i32
    %c0_i32_0 = arith.constant 0 : i32
    %c0_i32_1 = arith.constant 0 : i32
    return %arg0, %c0_i32, %c0_i32_0 : i32, i32, i32
  }
  func.func @transform_1(%arg0: i32) -> (i32, i32, i32) {
    %c0_i32 = arith.constant 0 : i32
    %c0_i32_0 = arith.constant 0 : i32
    %c0_i32_1 = arith.constant 0 : i32
    return %arg0, %c0_i32, %c0_i32_0 : i32, i32, i32
  }
  func.func @transform_2(%arg0: i32) -> (i32, i32, i32) {
    %c0_i32 = arith.constant 0 : i32
    %c0_i32_0 = arith.constant 0 : i32
    %c0_i32_1 = arith.constant 0 : i32
    return %arg0, %c0_i32, %c0_i32_0 : i32, i32, i32
  }
  func.func @transform_3(%arg0: i32) -> (i32, i32, i32) {
    %c0_i32 = arith.constant 0 : i32
    %c0_i32_0 = arith.constant 0 : i32
    %c0_i32_1 = arith.constant 0 : i32
    %c0_i32_2 = arith.constant 0 : i32
    return %c0_i32, %c0_i32_0, %c0_i32_1 : i32, i32, i32
  }
  func.func @transform_4(%arg0: i32) -> (i32, i32, i32) {
    %c0_i32 = arith.constant 0 : i32
    %c0_i32_0 = arith.constant 0 : i32
    %c0_i32_1 = arith.constant 0 : i32
    return %arg0, %c0_i32, %c0_i32_0 : i32, i32, i32
  }
  func.func @transform_5(%arg0: i32) -> (i32, i32) {
    %c0_i32 = arith.constant 0 : i32
    %c0_i32_0 = arith.constant 0 : i32
    %c0_i32_1 = arith.constant 0 : i32
    return %c0_i32, %c0_i32_0 : i32, i32
  }
  func.func @transform_6(%arg0: i32) -> (i32, i32) {
    %c0_i32 = arith.constant 0 : i32
    %c0_i32_0 = arith.constant 0 : i32
    %c0_i32_1 = arith.constant 0 : i32
    return %c0_i32, %c0_i32_0 : i32, i32
  }
}

</mosaic_0001>

<bundles_post_ra>
// kernel: tpu_custom_call.1
= control target key start
LH: loop header
LB: loop body
LE: loop exit
PB: predicated region body
PF: predicated region fallthrough
CT: control target
= control target key end

     0   :  { %12 = vsyncpa [#allocation3], 0  ;;  %s6335_s0 = inlined_call_operand.vmem [shape: bf16[2,288,5], index: 0, kind: input, shape index: {}]   ;;  %s6336_s1 = inlined_call_operand.vmem [shape: bf16[2,288,5], index: 1, kind: input, shape index: {}]   ;;  %s6337_s2 = inlined_call_operand.vmem [shape: bf16[2,288,5], index: 2, kind: input, shape index: {}]   ;;  %s6338_s3 = inlined_call_operand.vmem [shape: bf16[9,5,128], index: 3, kind: input, shape index: {}]   ;;  %s6339_s4 = inlined_call_operand.hbm [shape: f32[2,256,128], index: 4, kind: output, shape index: {0}]   ;;  %s6340_s5 = inlined_call_operand.hbm [shape: f32[1,128], index: 5, kind: output, shape index: {1}]   ;;  %s6341_s6 = inlined_call_operand.hbm [shape: f32[1,128], index: 6, kind: output, shape index: {2}]  }
   0x1   :  { %14 = vsyncpa [#allocation3 + $0x1], 0 }
   0x2   :  { %15 = vsyncpa [#allocation5], 0  ;;  %s5778_s21 = smov 0   ;;  %s5780_s22 = smov 0  }
   0x3   :  { %s5782_s23 = smov 0   ;;  %s5784_s24 = smov 0  }
   0x4 LB: > { %s5799_s25 = sadd.s32 4294967295, %s5734_s24   ;;  %s4318_s26 = sadd.s32 4294967294, %s5734_s24   ;;  %s5734_s24 = sphi %s5784_s24, %s6347_s24   ;;  %s5730_s23 = sphi %s5782_s23, %s6346_s23   ;;  %s5726_s22 = sphi %s5780_s22, %s6345_s22   ;;  %s5722_s21 = sphi %s5778_s21, %s6344_s21  }
   0x5   : > { %s5803_s27 = sadd.s32 1, %s5734_s24   ;;  %s127_s28 = sadd.s32 1, %s5730_s23 }
   0x6   : > { %s124_s29 = ssub.s32 %s5734_s24, %s5803_s27  ;;  %p137_p0 = scmp.ne.s32.totalorder %s5730_s23, %s5726_s22 }
   0x7   : > { %p125_p1 = scmp.eq.s32.totalorder %s124_s29, 0  ;;  %p138_p2 = scmp.eq.s32.totalorder %s5799_s25, 1 }
   0x8   : > { %p143_p3 = scmp.ne.s32.totalorder %s5726_s22, %s5722_s21  ;;  %p144_p4 = scmp.eq.s32.totalorder %s4318_s26, 1 }
   0x9   : > { %s5814_s30 = scalar_select %p125_p1, %s5730_s23, %s127_s28  }
   0xa   : > { %p5818_p5 = por %p138_p2, %p137_p0  ;;  %p5822_p6 = por %p144_p4, %p143_p3 }
   0xb   : > { %p4321_p7 = scmp.ge.s32.totalorder %s5734_s24, 1  ;;  %p231_p8 = scmp.lt.s32.totalorder %s5734_s24, 3 }
   0xd   : > { %p232_p9 = pnand %p4321_p7, %p231_p8 }
   0xe   : > { %s264_s9 = sand.u32 (!%p232_p9), 1, %s5726_s22   ;;  %p271_p10 = scmp.lt.s32.totalorder (!%p232_p9), %s5799_s25, 1 }
   0xf   : > { %235 = sbr.rel (%p232_p9) target bundleno = 603 (0x25b), region = 36  ;;  %s4322_s10 = sshll.u32 (!%p232_p9), %s264_s9, 8 }
  0x10   : > { %s5848_s28 = scalar_lea.vmem (!%p232_p9), [#allocation2], %s4322_s10  ;;  %p4326_p11 = scmp.ne.s32.totalorder (!%p232_p9), %s5799_s25, 0 }
  0x16   : > { %s272_s11 = scalar_select %p271_p10, %s5799_s25, 1 }
  0x17   : > { %290 = sbr.rel (%p4326_p11) target bundleno = 30 (0x1e), region = 40  ;;  %v5736_v0 = vmov (!%p4326_p11), 0.0  }
  0x18   : > { %s5414_s12 = smul.u32 144, %s272_s11  ;;  %291 = vst [vmem:[#allocation4] sm:$0x1] (!%p4326_p11), %v5736_v0  ;;  %292 = vst [vmem:[#allocation6] sm:$0x1] (!%p4326_p11), %v5736_v0 }
  0x1a   : > { %s5836_s15 = scalar_lea.vmem %s6335_s0, %s5414_s12  ;;  %s5841_s18 = scalar_lea.vmem %s6336_s1, %s5414_s12 }
  0x1b   : > { %s5846_s26 = scalar_lea.vmem %s6337_s2, %s5414_s12 }
  0x1e PF: > { %v325_v1 = vld [vmem:[%s6338_s3] sm:$0x7]  ;;  %vm455_vm0 = vcmask 1041408   ;;  %vm456_vm1 = vcmask 1042432   ;;  %v5737_v3 = vmov 65535   ;;  %vm406_vm2 = vcmask 39936  }
  0x1f   : > { %v5472_v2 = vld [vmem:[%s5836_s15] sm:$0xff]   ;;  %v457_v4 = vsel %vm455_vm0, 4294967295, %v5737_v3  ;;  %v4458_v5 = vld [vmem:[%s6338_s3 + $0x10] sm:$0x7]  ;;  %v5473_v7 = vld [vmem:[%s5841_s18 + $0x8] sm:$0xff]   ;;  %s6246_s29 = scalar_lea.sflag [#allocation3], %s264_s9 }
  0x20   : > { %v5858_v6 = vsel %vm456_vm1, %v457_v4, 0  ;;  %4788 = vmatprep.mubr.msk.bf16.mxu1 %vm406_vm2, %v5472_v2  ;;  %4924 = vmatprep.mubr.msk.bf16.mxu0 %vm406_vm2, %v5473_v7  ;;  %v5474_v10 = vld [vmem:[%s5836_s15 + $0x8] sm:$0xff]   ;;  %v4359_v11 = vld [vmem:[%s6338_s3 + $0x4] sm:$0x7]  ;;  %v5475_v13 = vld [vmem:[%s5841_s18 + $0x10] sm:$0xff]   ;;  %s5738_s10 = smov [#allocation2]  }
  0x21   : > { %v460_v8 = vand.u32 %v5858_v6, %v325_v1  ;;  %v5864_v9 = vand.u32 %v4458_v5, %v5858_v6  ;;  %v818_v12 = vand.u32 %v4359_v11, %v5858_v6  ;;  %v5476_v14 = vld [vmem:[%s5836_s15 + $0x10] sm:$0xff]   ;;  %v5477_v15 = vld [vmem:[%s5841_s18 + $0x18] sm:$0xff]   ;;  %v5479_v19 = vld [vmem:[%s5841_s18 + $0x20] sm:$0xff]   ;;  %s5620_s12 = sshll.u32 %s5738_s10, 4  ;;  %s5621_s12 = int_to_ptr.vmem [resolvable:$false] %s5620_s12 }
  0x22   : > { %v4491_v16 = vld [vmem:[%s6338_s3 + $0x14] sm:$0x7]  ;;  %v5478_v18 = vld [vmem:[%s5836_s15 + $0x18] sm:$0xff]   ;;  %v5480_v20 = vld [vmem:[%s5836_s15 + $0x20] sm:$0xff]   ;;  %s5622_s13 = scalar_lea.vmem %s5621_s12, 8192 }
  0x23   : > { %4786 = vmatprep.subr.bf16.mxu1 %v460_v8  ;;  %4922 = vmatprep.subr.bf16.mxu0 %v5864_v9  ;;  %v2506_v17 = vand.u32 %v4491_v16, %v5858_v6  ;;  %v5481_v21 = vld [vmem:[%s5841_s18 + $0x28] sm:$0xff]   ;;  %v5483_v23 = vld [vmem:[%s5841_s18 + $0x30] sm:$0xff]   ;;  %v5485_v25 = vld [vmem:[%s5841_s18 + $0x38] sm:$0xff]  }
  0x24   : > { %4787 = vmatpush3.bf16.msra.mxu1 %v460_v8  ;;  %4923 = vmatpush3.bf16.msra.mxu0 %v5864_v9  ;;  %v5482_v22 = vld [vmem:[%s5836_s15 + $0x28] sm:$0xff]   ;;  %v5484_v24 = vld [vmem:[%s5836_s15 + $0x30] sm:$0xff]   ;;  %v4524_v26 = vld [vmem:[%s6338_s3 + $0x18] sm:$0x7] }
  0x25   : > { %4820 = vmatprep.subr.bf16.mxu1 %v818_v12  ;;  %4956 = vmatprep.subr.bf16.mxu0 %v2506_v17  ;;  %v5486_v27 = vld [vmem:[%s5836_s15 + $0x38] sm:$0xff]   ;;  %v2928_v28 = vand.u32 %v4524_v26, %v5858_v6  ;;  %v5487_v29 = vld [vmem:[%s5841_s18 + $0x40] sm:$0xff]   ;;  %v5489_v31 = vld [vmem:[%s5846_s26 + $0x8] sm:$0xff]  }
  0x26   : > { %v5488_v30 = vld [vmem:[%s5836_s15 + $0x40] sm:$0xff]   ;;  %v5490_v32 = vld [vmem:[%s5836_s15 + $0x48] sm:$0xff]   ;;  %v5491_v33 = vld [vmem:[%s5846_s26 + $0x10] sm:$0xff]  }
  0x27   : > { %4789 = vmatmul.mubr.msk.bf16.vlgmr.msra.gmra.mrb[0].mxu1 %vm406_vm2, %v5474_v10  ;;  %4925 = vmatmul.mubr.msk.bf16.vlgmr.msra.gmra.mrb[0].mxu0 %vm406_vm2, %v5475_v13  ;;  %v5492_v34 = vld [vmem:[%s5836_s15 + $0x50] sm:$0xff]   ;;  %v4392_v35 = vld [vmem:[%s6338_s3 + $0x8] sm:$0x7]  ;;  %v5493_v36 = vld [vmem:[%s5846_s26 + $0x18] sm:$0xff]  }
  0x28   : > { %4821 = vmatpush3.bf16.msra.mxu1 %v818_v12  ;;  %4792 = vmatprep.mubr.msk.bf16.mxu1 %vm406_vm2, %v5476_v14  ;;  %v1240_v37 = vand.u32 %v4392_v35, %v5858_v6  ;;  %v5494_v38 = vld [vmem:[%s5836_s15 + $0x58] sm:$0xff]   ;;  %v5495_v39 = vld [vmem:[%s5846_s26 + $0x20] sm:$0xff]   ;;  %v5497_v41 = vld [vmem:[%s5846_s26 + $0x28] sm:$0xff]  }
  0x29   : > { %4928 = vmatprep.mubr.msk.bf16.mxu0 %vm406_vm2, %v5477_v15  ;;  %4957 = vmatpush3.bf16.msra.mxu0 %v2506_v17  ;;  %v5496_v40 = vld [vmem:[%s5836_s15 + $0x60] sm:$0xff]   ;;  %v5498_v42 = vld [vmem:[%s5836_s15 + $0x68] sm:$0xff]   ;;  %v5499_v43 = vld [vmem:[%s5846_s26 + $0x30] sm:$0xff]  }
  0x2a   : > { %4990 = vmatprep.subr.bf16.mxu0 %v2928_v28  ;;  %4854 = vmatprep.subr.bf16.mxu1 %v1240_v37  ;;  %v5500_v44 = vld [vmem:[%s5836_s15 + $0x70] sm:$0xff]   ;;  %v5501_v45 = vld [vmem:[%s5846_s26 + $0x38] sm:$0xff]   ;;  %v5503_v49 = vld [vmem:[%s5846_s26 + $0x40] sm:$0xff]  }
  0x2b   : > { %v4557_v46 = vld [vmem:[%s6338_s3 + $0x1c] sm:$0x7]  ;;  %v5504_v50 = vld [vmem:[%s5841_s18] sm:$0xff]   ;;  %v5505_v51 = vld [vmem:[%s5846_s26 + $0x48] sm:$0xff]  }
  0x2c   : > { %v5502_v47 = vld [vmem:[%s5836_s15 + $0x78] sm:$0xff]   ;;  %v3350_v48 = vand.u32 %v4557_v46, %v5858_v6  ;;  %v5506_v52 = vld [vmem:[%s5841_s18 + $0x8] sm:$0xff]   ;;  %v5507_v53 = vld [vmem:[%s5846_s26 + $0x50] sm:$0xff]  }
  0x2d   : > { %v5508_v54 = vld [vmem:[%s5841_s18 + $0x10] sm:$0xff]   ;;  %v4425_v55 = vld [vmem:[%s6338_s3 + $0xc] sm:$0x7]  ;;  %v5509_v56 = vld [vmem:[%s5846_s26 + $0x58] sm:$0xff]  }
  0x2e   : > { %v5961_v57 = vand.u32 %v4425_v55, %v5858_v6  ;;  %v5510_v58 = vld [vmem:[%s5841_s18 + $0x18] sm:$0xff]   ;;  %v5511_v59 = vld [vmem:[%s5846_s26 + $0x60] sm:$0xff]   ;;  %v5513_v61 = vld [vmem:[%s5846_s26 + $0x68] sm:$0xff]  }
  0x2f   : > { %4793 = vmatmul.mubr.msk.bf16.gmra.mrb[4].mxu1 %vm406_vm2, %v5478_v18  ;;  %4929 = vmatmul.mubr.msk.bf16.gmra.mrb[4].mxu0 %vm406_vm2, %v5479_v19  ;;  %v5512_v60 = vld [vmem:[%s5841_s18 + $0x20] sm:$0xff]   ;;  %v5514_v62 = vld [vmem:[%s5841_s18 + $0x28] sm:$0xff]   ;;  %v5515_v63 = vld [vmem:[%s5846_s26 + $0x70] sm:$0xff]  }
  0x30   : > { %4796 = vmatprep.mubr.msk.bf16.mxu1 %vm406_vm2, %v5480_v20  ;;  %4932 = vmatprep.mubr.msk.bf16.mxu0 %vm406_vm2, %v5481_v21  ;;  %v5516_v0 = vld [vmem:[%s5841_s18 + $0x30] sm:$0xff]   ;;  %v5517_v1 = vld [vmem:[%s5846_s26 + $0x78] sm:$0xff]   ;;  %v5519_v3 = vld [vmem:[%s5846_s26 + $0x80] sm:$0xff]  }
  0x31   : > { %v5518_v2 = vld [vmem:[%s5841_s18 + $0x38] sm:$0xff]   ;;  %v5520_v4 = vld [vmem:[%s5841_s18 + $0x40] sm:$0xff]   ;;  %v5521_v5 = vld [vmem:[%s5836_s15 + $0x10] sm:$0xff]  }
  0x32   : > { %v5522_v7 = vld [vmem:[%s5841_s18 + $0x48] sm:$0xff]   ;;  %v5523_v8 = vld [vmem:[%s5836_s15 + $0x18] sm:$0xff]   ;;  %v5524_v10 = vld [vmem:[%s5841_s18 + $0x50] sm:$0xff]  }
  0x33   : > { %v4590_v11 = vld [vmem:[%s6338_s3 + $0x20] sm:$0x7]  ;;  %v5526_v14 = vld [vmem:[%s5841_s18 + $0x58] sm:$0xff]   ;;  %v5527_v15 = vld [vmem:[%s5836_s15 + $0x28] sm:$0xff]  }
  0x34   : > { %v5525_v12 = vld [vmem:[%s5836_s15 + $0x20] sm:$0xff]   ;;  %v6000_v13 = vand.u32 %v4590_v11, %v5858_v6  ;;  %v5529_v16 = vld [vmem:[%s5836_s15 + $0x30] sm:$0xff]   ;;  %v5530_v17 = vld [vmem:[%s5841_s18 + $0x68] sm:$0xff]  }
  0x35   : > { %v5528_v6 = vld [vmem:[%s5841_s18 + $0x60] sm:$0xff]   ;;  %v5531_v18 = vld [vmem:[%s5836_s15 + $0x38] sm:$0xff]   ;;  %v5532_v19 = vld [vmem:[%s5841_s18 + $0x70] sm:$0xff]  }
  0x36   : > { %v5533_v20 = vld [vmem:[%s5836_s15 + $0x40] sm:$0xff]   ;;  %v5534_v21 = vld [vmem:[%s5841_s18 + $0x78] sm:$0xff]   ;;  %v5548_v35 = vld [vmem:[%s5846_s26 + $0x30] sm:$0xff]  }
  0x37   : > { %4797 = vmatmul.mubr.msk.bf16.gmra.mrb[8].mxu1 %vm406_vm2, %v5482_v22  ;;  %4933 = vmatmul.mubr.msk.bf16.gmra.mrb[8].mxu0 %vm406_vm2, %v5483_v23  ;;  %v5535_v22 = vld [vmem:[%s5836_s15 + $0x48] sm:$0xff]   ;;  %v5536_v23 = vld [vmem:[%s5846_s26] sm:$0xff]   ;;  %v5539_v26 = vld [vmem:[%s5836_s15 + $0x58] sm:$0xff]  }
  0x38   : > { %4800 = vmatprep.mubr.msk.bf16.mxu1 %vm406_vm2, %v5484_v24  ;;  %4936 = vmatprep.mubr.msk.bf16.mxu0 %vm406_vm2, %v5485_v25  ;;  %v5537_v24 = vld [vmem:[%s5836_s15 + $0x50] sm:$0xff]   ;;  %v5538_v25 = vld [vmem:[%s5846_s26 + $0x8] sm:$0xff]   ;;  %v5587_v11 = vld [vmem:[%s5846_s26 + $0x18] sm:$0xff]  }
  0x39   : > { %v5559_v46 = vld [vmem:[%s5841_s18 + $0x28] sm:$0xff]  }
  0x3a   : > { %v5568_v55 = vld [vmem:[%s5836_s15 + $0x8] sm:$0xff]  }
  0x3f   : > { %4801 = vmatmul.mubr.msk.bf16.gmra.mrb[12].mxu1 %vm406_vm2, %v5486_v27  ;;  %4937 = vmatmul.mubr.msk.bf16.gmra.mrb[12].mxu0 %vm406_vm2, %v5487_v29  ;;  %v5540_v27 = vld [vmem:[%s5846_s26 + $0x10] sm:$0xff]   ;;  %v5542_v29 = vld [vmem:[%s5846_s26 + $0x18] sm:$0xff]  }
  0x40   : > { %4804 = vmatprep.mubr.msk.bf16.mxu1 %vm406_vm2, %v5488_v30  ;;  %4958 = vmatprep.mubr.msk.bf16.mxu0 %vm406_vm2, %v5489_v31  ;;  %v5543_v30 = vld [vmem:[%s5836_s15 + $0x68] sm:$0xff]   ;;  %v5544_v31 = vld [vmem:[%s5846_s26 + $0x20] sm:$0xff]  }
  0x47   : > { %4805 = vmatmul.mubr.msk.bf16.gmra.mrb[16].mxu1 %vm406_vm2, %v5490_v32  ;;  %4959 = vmatmul.mubr.msk.bf16.vlgmr.msra.gmra.mrb[0].mxu0 %vm406_vm2, %v5491_v33  ;;  %v5545_v32 = vld [vmem:[%s5836_s15 + $0x70] sm:$0xff]   ;;  %v5546_v33 = vld [vmem:[%s5846_s26 + $0x28] sm:$0xff]  }
  0x48   : > { %4808 = vmatprep.mubr.msk.bf16.mxu1 %vm406_vm2, %v5492_v34  ;;  %4962 = vmatprep.mubr.msk.bf16.mxu0 %vm406_vm2, %v5493_v36  ;;  %v5547_v34 = vld [vmem:[%s5836_s15 + $0x78] sm:$0xff]   ;;  %v5549_v36 = vld [vmem:[%s5836_s15 + $0x80] sm:$0xff]  }
  0x49   : > { %4991 = vmatpush3.bf16.msra.mxu0 %v2928_v28  ;;  %v5541_v28 = vld [vmem:[%s5836_s15 + $0x60] sm:$0xff]  }
  0x4a   : > { %5024 = vmatprep.subr.bf16.mxu0 %v3350_v48 }
  0x4f   : > { %4809 = vmatmul.mubr.msk.bf16.gmra.mrb[20].mxu1 %vm406_vm2, %v5494_v38  ;;  %4963 = vmatmul.mubr.msk.bf16.gmra.mrb[4].mxu0 %vm406_vm2, %v5495_v39  ;;  %v5551_v38 = vld [vmem:[%s5836_s15 + $0x88] sm:$0xff]   ;;  %v5552_v39 = vld [vmem:[%s5846_s26 + $0x40] sm:$0xff]  }
  0x50   : > { %4812 = vmatprep.mubr.msk.bf16.mxu1 %vm406_vm2, %v5496_v40  ;;  %4966 = vmatprep.mubr.msk.bf16.mxu0 %vm406_vm2, %v5497_v41  ;;  %v5553_v40 = vld [vmem:[%s5841_s18 + $0x10] sm:$0xff]   ;;  %v5554_v41 = vld [vmem:[%s5846_s26 + $0x48] sm:$0xff]  }
  0x57   : > { %4813 = vmatmul.mubr.msk.bf16.gmra.mrb[24].mxu1 %vm406_vm2, %v5498_v42  ;;  %4967 = vmatmul.mubr.msk.bf16.gmra.mrb[8].mxu0 %vm406_vm2, %v5499_v43  ;;  %v5555_v42 = vld [vmem:[%s5841_s18 + $0x18] sm:$0xff]   ;;  %v5556_v43 = vld [vmem:[%s5846_s26 + $0x50] sm:$0xff]  }
  0x58   : > { %4816 = vmatprep.mubr.msk.bf16.mxu1 %vm406_vm2, %v5500_v44  ;;  %4970 = vmatprep.mubr.msk.bf16.mxu0 %vm406_vm2, %v5501_v45  ;;  %v5557_v44 = vld [vmem:[%s5841_s18 + $0x20] sm:$0xff]   ;;  %v5558_v45 = vld [vmem:[%s5846_s26 + $0x58] sm:$0xff]  }
  0x5f   : > { %4817 = vmatmul.mubr.msk.bf16.gmra.mrb[28].mxu1 %vm406_vm2, %v5502_v47  ;;  %4971 = vmatmul.mubr.msk.bf16.gmra.mrb[12].mxu0 %vm406_vm2, %v5503_v49  ;;  %v5560_v47 = vld [vmem:[%s5846_s26 + $0x60] sm:$0xff]   ;;  %v5562_v49 = vld [vmem:[%s5846_s26 + $0x68] sm:$0xff]  }
  0x60   : > { %4822 = vmatprep.mubr.msk.bf16.mxu1 %vm406_vm2, %v5504_v50  ;;  %4974 = vmatprep.mubr.msk.bf16.mxu0 %vm406_vm2, %v5505_v51  ;;  %v5563_v50 = vld [vmem:[%s5841_s18 + $0x38] sm:$0xff]   ;;  %v5564_v51 = vld [vmem:[%s5846_s26 + $0x70] sm:$0xff]  }
  0x67   : > { %4823 = vmatmul.mubr.msk.bf16.vlgmr.msra.gmra.mrb[0].mxu1 %vm406_vm2, %v5506_v52  ;;  %4975 = vmatmul.mubr.msk.bf16.gmra.mrb[16].mxu0 %vm406_vm2, %v5507_v53  ;;  %v5565_v52 = vld [vmem:[%s5841_s18 + $0x40] sm:$0xff]   ;;  %v5566_v53 = vld [vmem:[%s5846_s26 + $0x78] sm:$0xff]  }
  0x68   : > { %4855 = vmatpush3.bf16.msra.mxu1 %v1240_v37  ;;  %4826 = vmatprep.mubr.msk.bf16.mxu1 %vm406_vm2, %v5508_v54  ;;  %v5550_v37 = vld [vmem:[%s5846_s26 + $0x38] sm:$0xff]   ;;  %v5567_v54 = vld [vmem:[%s5841_s18 + $0x48] sm:$0xff]  }
  0x69   : > { %4978 = vmatprep.mubr.msk.bf16.mxu0 %vm406_vm2, %v5509_v56  ;;  %4888 = vmatprep.subr.bf16.mxu1 %v5961_v57  ;;  %v5569_v56 = vld [vmem:[%s5841_s18 + $0x50] sm:$0xff]  }
  0x6f   : > { %4827 = vmatmul.mubr.msk.bf16.gmra.mrb[4].mxu1 %vm406_vm2, %v5510_v58  ;;  %4979 = vmatmul.mubr.msk.bf16.gmra.mrb[20].mxu0 %vm406_vm2, %v5511_v59  ;;  %v5571_v58 = vld [vmem:[%s5841_s18 + $0x58] sm:$0xff]  }
  0x70   : > { %4830 = vmatprep.mubr.msk.bf16.mxu1 %vm406_vm2, %v5512_v60  ;;  %4982 = vmatprep.mubr.msk.bf16.mxu0 %vm406_vm2, %v5513_v61  ;;  %v5572_v59 = vld [vmem:[%s5836_s15 + $0x18] sm:$0xff]   ;;  %v5573_v60 = vld [vmem:[%s5841_s18 + $0x60] sm:$0xff]  }
  0x71   : > { %v5574_v61 = vld [vmem:[%s5836_s15 + $0x20] sm:$0xff]  }
  0x77   : > { %4831 = vmatmul.mubr.msk.bf16.gmra.mrb[8].mxu1 %vm406_vm2, %v5514_v62  ;;  %4983 = vmatmul.mubr.msk.bf16.gmra.mrb[24].mxu0 %vm406_vm2, %v5515_v63  ;;  %v5575_v62 = vld [vmem:[%s5841_s18 + $0x68] sm:$0xff]  }
  0x78   : > { %4834 = vmatprep.mubr.msk.bf16.mxu1 %vm406_vm2, %v5516_v0  ;;  %4986 = vmatprep.mubr.msk.bf16.mxu0 %vm406_vm2, %v5517_v1  ;;  %v5576_v63 = vld [vmem:[%s5836_s15 + $0x28] sm:$0xff]   ;;  %v5577_v0 = vld [vmem:[%s5841_s18 + $0x70] sm:$0xff]   ;;  %v5579_v1 = vld [vmem:[%s5841_s18 + $0x78] sm:$0xff]  }
  0x7f   : > { %4835 = vmatmul.mubr.msk.bf16.gmra.mrb[12].mxu1 %vm406_vm2, %v5518_v2  ;;  %4987 = vmatmul.mubr.msk.bf16.gmra.mrb[28].mxu0 %vm406_vm2, %v5519_v3  ;;  %v5580_v2 = vld [vmem:[%s5836_s15 + $0x38] sm:$0xff]   ;;  %v5581_v3 = vld [vmem:[%s5841_s18 + $0x80] sm:$0xff]  }
  0x80   : > { %4838 = vmatprep.mubr.msk.bf16.mxu1 %vm406_vm2, %v5520_v4  ;;  %4992 = vmatprep.mubr.msk.bf16.mxu0 %vm406_vm2, %v5521_v5  ;;  %v5582_v4 = vld [vmem:[%s5836_s15 + $0x40] sm:$0xff]   ;;  %v5583_v5 = vld [vmem:[%s5841_s18 + $0x88] sm:$0xff]  }
  0x87   : > { %4839 = vmatmul.mubr.msk.bf16.gmra.mrb[16].mxu1 %vm406_vm2, %v5522_v7  ;;  %4993 = vmatmul.mubr.msk.bf16.vlgmr.msra.gmra.mrb[0].mxu0 %vm406_vm2, %v5523_v8  ;;  %v5584_v7 = vld [vmem:[%s5836_s15 + $0x48] sm:$0xff]   ;;  %v5585_v8 = vld [vmem:[%s5846_s26 + $0x10] sm:$0xff]  }
  0x88   : > { %4842 = vmatprep.mubr.msk.bf16.mxu1 %vm406_vm2, %v5524_v10  ;;  %4996 = vmatprep.mubr.msk.bf16.mxu0 %vm406_vm2, %v5525_v12  ;;  %v5586_v10 = vld [vmem:[%s5836_s15 + $0x50] sm:$0xff]   ;;  %v5588_v12 = vld [vmem:[%s5836_s15 + $0x58] sm:$0xff]  }
  0x89   : > { %5025 = vmatpush3.bf16.msra.mxu0 %v3350_v48  ;;  %v5561_v48 = vld [vmem:[%s5841_s18 + $0x30] sm:$0xff]  }
  0x8a   : > { %5058 = vmatprep.subr.bf16.mxu0 %v6000_v13 }
  0x8f   : > { %4843 = vmatmul.mubr.msk.bf16.gmra.mrb[20].mxu1 %vm406_vm2, %v5526_v14  ;;  %4997 = vmatmul.mubr.msk.bf16.gmra.mrb[4].mxu0 %vm406_vm2, %v5527_v15  ;;  %v5590_v14 = vld [vmem:[%s5836_s15 + $0x60] sm:$0xff]   ;;  %v5591_v15 = vld [vmem:[%s5846_s26 + $0x28] sm:$0xff]  }
  0x90   : > { %4846 = vmatprep.mubr.msk.bf16.mxu1 %vm406_vm2, %v5528_v6  ;;  %5000 = vmatprep.mubr.msk.bf16.mxu0 %vm406_vm2, %v5529_v16  ;;  %v5592_v6 = vld [vmem:[%s5836_s15 + $0x68] sm:$0xff]   ;;  %v5593_v16 = vld [vmem:[%s5846_s26 + $0x30] sm:$0xff]  }
  0x97   : > { %4847 = vmatmul.mubr.msk.bf16.gmra.mrb[24].mxu1 %vm406_vm2, %v5530_v17  ;;  %5001 = vmatmul.mubr.msk.bf16.gmra.mrb[8].mxu0 %vm406_vm2, %v5531_v18  ;;  %v5594_v17 = vld [vmem:[%s5836_s15 + $0x70] sm:$0xff]   ;;  %v5595_v18 = vld [vmem:[%s5846_s26 + $0x38] sm:$0xff]  }
  0x98   : > { %4850 = vmatprep.mubr.msk.bf16.mxu1 %vm406_vm2, %v5532_v19  ;;  %5004 = vmatprep.mubr.msk.bf16.mxu0 %vm406_vm2, %v5533_v20  ;;  %v5596_v19 = vld [vmem:[%s5836_s15 + $0x78] sm:$0xff]   ;;  %v5597_v20 = vld [vmem:[%s5846_s26 + $0x40] sm:$0xff]  }
  0x9f   : > { %4851 = vmatmul.mubr.msk.bf16.gmra.mrb[28].mxu1 %vm406_vm2, %v5534_v21  ;;  %5005 = vmatmul.mubr.msk.bf16.gmra.mrb[12].mxu0 %vm406_vm2, %v5535_v22  ;;  %v5598_v21 = vld [vmem:[%s5836_s15 + $0x80] sm:$0xff]   ;;  %v5599_v22 = vld [vmem:[%s5846_s26 + $0x48] sm:$0xff]  }
  0xa0   : > { %4856 = vmatprep.mubr.msk.bf16.mxu1 %vm406_vm2, %v5536_v23  ;;  %5008 = vmatprep.mubr.msk.bf16.mxu0 %vm406_vm2, %v5537_v24  ;;  %v5600_v23 = vld [vmem:[%s5841_s18 + $0x48] sm:$0xff]   ;;  %v5601_v24 = vld [vmem:[%s5846_s26 + $0x50] sm:$0xff]  }
  0xa7   : > { %4857 = vmatmul.mubr.msk.bf16.vlgmr.msra.gmra.mrb[0].mxu1 %vm406_vm2, %v5538_v25  ;;  %5009 = vmatmul.mubr.msk.bf16.gmra.mrb[16].mxu0 %vm406_vm2, %v5539_v26  ;;  %v5602_v25 = vld [vmem:[%s5841_s18 + $0x50] sm:$0xff]   ;;  %v5603_v26 = vld [vmem:[%s5846_s26 + $0x58] sm:$0xff]  }
  0xa8   : > { %4889 = vmatpush3.bf16.msra.mxu1 %v5961_v57  ;;  %4860 = vmatprep.mubr.msk.bf16.mxu1 %vm406_vm2, %v5540_v27  ;;  %v5570_v57 = vld [vmem:[%s5836_s15 + $0x10] sm:$0xff]   ;;  %v5604_v27 = vld [vmem:[%s5841_s18 + $0x58] sm:$0xff]  }
  0xa9   : > { %5012 = vmatprep.mubr.msk.bf16.mxu0 %vm406_vm2, %v5541_v28  ;;  %5092 = vmatprep.subr.bf16.mxu1 %v5864_v9  ;;  %v5605_v28 = vld [vmem:[%s5846_s26 + $0x60] sm:$0xff]  }
  0xaf   : > { %4861 = vmatmul.mubr.msk.bf16.gmra.mrb[4].mxu1 %vm406_vm2, %v5542_v29  ;;  %5013 = vmatmul.mubr.msk.bf16.gmra.mrb[20].mxu0 %vm406_vm2, %v5543_v30  ;;  %v5606_v29 = vld [vmem:[%s5841_s18 + $0x60] sm:$0xff]   ;;  %v5607_v30 = vld [vmem:[%s5846_s26 + $0x68] sm:$0xff]  }
  0xb0   : > { %4864 = vmatprep.mubr.msk.bf16.mxu1 %vm406_vm2, %v5544_v31  ;;  %5016 = vmatprep.mubr.msk.bf16.mxu0 %vm406_vm2, %v5545_v32  ;;  %v5608_v31 = vld [vmem:[%s5841_s18 + $0x68] sm:$0xff]   ;;  %v5609_v32 = vld [vmem:[%s5846_s26 + $0x70] sm:$0xff]  }
  0xb7   : > { %4865 = vmatmul.mubr.msk.bf16.gmra.mrb[8].mxu1 %vm406_vm2, %v5546_v33  ;;  %5017 = vmatmul.mubr.msk.bf16.gmra.mrb[24].mxu0 %vm406_vm2, %v5547_v34  ;;  %v5610_v33 = vld [vmem:[%s5841_s18 + $0x70] sm:$0xff]   ;;  %v5611_v34 = vld [vmem:[%s5846_s26 + $0x78] sm:$0xff]  }
  0xb8   : > { %4868 = vmatprep.mubr.msk.bf16.mxu1 %vm406_vm2, %v5548_v35  ;;  %5020 = vmatprep.mubr.msk.bf16.mxu0 %vm406_vm2, %v5549_v36  ;;  %v5612_v35 = vld [vmem:[%s5841_s18 + $0x78] sm:$0xff]   ;;  %v5613_v36 = vld [vmem:[%s5846_s26 + $0x80] sm:$0xff]  }
  0xbf   : > { %4869 = vmatmul.mubr.msk.bf16.gmra.mrb[12].mxu1 %vm406_vm2, %v5550_v37  ;;  %5021 = vmatmul.mubr.msk.bf16.gmra.mrb[28].mxu0 %vm406_vm2, %v5551_v38  ;;  %v5614_v37 = vld [vmem:[%s5841_s18 + $0x80] sm:$0xff]   ;;  %v5615_v38 = vld [vmem:[%s5846_s26 + $0x88] sm:$0xff]   ;;  %s4189_s18 = sshll.u32 %s5848_s28, 4  ;;  %s6239_s18 = int_to_ptr.vmem [resolvable:$true] %s4189_s18 }
  0xc0   : > { %4872 = vmatprep.mubr.msk.bf16.mxu1 %vm406_vm2, %v5552_v39  ;;  %5026 = vmatprep.mubr.msk.bf16.mxu0 %vm406_vm2, %v5553_v40  ;;  %s5616_s11 = scalar_lea.vmem %s6239_s18, 4096  ;;  %p5623_p1 = scmp.lt.s32.totalorder %s6239_s18, %s5621_s12 }
  0xc1   : > { %p5617_p12 = scmp.ne.s32.totalorder %s6239_s18, %s5616_s11  ;;  %p5624_p3 = scmp.lt.s32.totalorder %s5622_s13, %s5616_s11 }
  0xc3   : > { %p5618_p13 = pnand %p5617_p12, %p5818_p5  ;;  %p5625_p4 = por %p5624_p3, %p5623_p1 }
  0xc5   : > { %p5619_p0 = pneg %p5618_p13 }
  0xc7   : > { %4873 = vmatmul.mubr.msk.bf16.gmra.mrb[16].mxu1 %vm406_vm2, %v5554_v41  ;;  %5027 = vmatmul.mubr.msk.bf16.vlgmr.msra.gmra.mrb[0].mxu0 %vm406_vm2, %v5555_v42  ;;  %p5626_p7 = pnand %p5625_p4, %p5619_p0 }
  0xc8   : > { %4876 = vmatprep.mubr.msk.bf16.mxu1 %vm406_vm2, %v5556_v43  ;;  %5030 = vmatprep.mubr.msk.bf16.mxu0 %vm406_vm2, %v5557_v44 }
  0xc9   : > { %5059 = vmatpush3.bf16.msra.mxu0 %v6000_v13  ;;  %v5589_v13 = vld [vmem:[%s5846_s26 + $0x20] sm:$0xff]  }
  0xcf   : > { %4877 = vmatmul.mubr.msk.bf16.gmra.mrb[20].mxu1 %vm406_vm2, %v5558_v45  ;;  %5031 = vmatmul.mubr.msk.bf16.gmra.mrb[4].mxu0 %vm406_vm2, %v5559_v46 }
  0xd0   : > { %4880 = vmatprep.mubr.msk.bf16.mxu1 %vm406_vm2, %v5560_v47  ;;  %5034 = vmatprep.mubr.msk.bf16.mxu0 %vm406_vm2, %v5561_v48 }
  0xd7   : > { %4881 = vmatmul.mubr.msk.bf16.gmra.mrb[24].mxu1 %vm406_vm2, %v5562_v49  ;;  %5035 = vmatmul.mubr.msk.bf16.gmra.mrb[8].mxu0 %vm406_vm2, %v5563_v50 }
  0xd8   : > { %4884 = vmatprep.mubr.msk.bf16.mxu1 %vm406_vm2, %v5564_v51  ;;  %5038 = vmatprep.mubr.msk.bf16.mxu0 %vm406_vm2, %v5565_v52 }
  0xdf   : > { %4885 = vmatmul.mubr.msk.bf16.gmra.mrb[28].mxu1 %vm406_vm2, %v5566_v53  ;;  %5039 = vmatmul.mubr.msk.bf16.gmra.mrb[12].mxu0 %vm406_vm2, %v5567_v54 }
  0xe0   : > { %4890 = vmatprep.mubr.msk.bf16.mxu1 %vm406_vm2, %v5568_v55  ;;  %5042 = vmatprep.mubr.msk.bf16.mxu0 %vm406_vm2, %v5569_v56 }
  0xe7   : > { %4891 = vmatmul.mubr.msk.bf16.vlgmr.msra.gmra.mrb[0].mxu1 %vm406_vm2, %v5570_v57  ;;  %5043 = vmatmul.mubr.msk.bf16.gmra.mrb[16].mxu0 %vm406_vm2, %v5571_v58 }
  0xe8   : > { %5093 = vmatpush3.bf16.msra.mxu1 %v5864_v9  ;;  %4894 = vmatprep.mubr.msk.bf16.mxu1 %vm406_vm2, %v5572_v59  ;;  %v5578_v9 = vld [vmem:[%s5836_s15 + $0x30] sm:$0xff]   ;;  %s4632_s15 = sshll.u32 %s5799_s25, 12 }
  0xe9   : > { %5046 = vmatprep.mubr.msk.bf16.mxu0 %vm406_vm2, %v5573_v60  ;;  %s6237_s20 = scalar_lea.hbm %s6339_s4, %s4632_s15 }
  0xef   : > { %4895 = vmatmul.mubr.msk.bf16.gmra.mrb[4].mxu1 %vm406_vm2, %v5574_v61  ;;  %5047 = vmatmul.mubr.msk.bf16.gmra.mrb[20].mxu0 %vm406_vm2, %v5575_v62 }
  0xf0   : > { %4898 = vmatprep.mubr.msk.bf16.mxu1 %vm406_vm2, %v5576_v63  ;;  %5050 = vmatprep.mubr.msk.bf16.mxu0 %vm406_vm2, %v5577_v0 }
  0xf7   : > { %4899 = vmatmul.mubr.msk.bf16.gmra.mrb[8].mxu1 %vm406_vm2, %v5578_v9  ;;  %5051 = vmatmul.mubr.msk.bf16.gmra.mrb[24].mxu0 %vm406_vm2, %v5579_v1 }
  0xf8   : > { %4902 = vmatprep.mubr.msk.bf16.mxu1 %vm406_vm2, %v5580_v2  ;;  %5054 = vmatprep.mubr.msk.bf16.mxu0 %vm406_vm2, %v5581_v3 }
  0xff   : > { %4903 = vmatmul.mubr.msk.bf16.gmra.mrb[12].mxu1 %vm406_vm2, %v5582_v4  ;;  %5055 = vmatmul.mubr.msk.bf16.gmra.mrb[28].mxu0 %vm406_vm2, %v5583_v5 }
 0x100   : > { %4906 = vmatprep.mubr.msk.bf16.mxu1 %vm406_vm2, %v5584_v7  ;;  %5060 = vmatprep.mubr.msk.bf16.mxu0 %vm406_vm2, %v5585_v8 }
 0x107   : > { %4907 = vmatmul.mubr.msk.bf16.gmra.mrb[16].mxu1 %vm406_vm2, %v5586_v10  ;;  %5061 = vmatmul.mubr.msk.bf16.vlgmr.msra.gmra.mrb[0].mxu0 %vm406_vm2, %v5587_v11 }
 0x108   : > { %4910 = vmatprep.mubr.msk.bf16.mxu1 %vm406_vm2, %v5588_v12  ;;  %5064 = vmatprep.mubr.msk.bf16.mxu0 %vm406_vm2, %v5589_v13 }
 0x10f   : > { %4911 = vmatmul.mubr.msk.bf16.gmra.mrb[20].mxu1 %vm406_vm2, %v5590_v14  ;;  %5065 = vmatmul.mubr.msk.bf16.gmra.mrb[4].mxu0 %vm406_vm2, %v5591_v15 }
 0x110   : > { %4914 = vmatprep.mubr.msk.bf16.mxu1 %vm406_vm2, %v5592_v6  ;;  %5068 = vmatprep.mubr.msk.bf16.mxu0 %vm406_vm2, %v5593_v16 }
 0x117   : > { %4915 = vmatmul.mubr.msk.bf16.gmra.mrb[24].mxu1 %vm406_vm2, %v5594_v17  ;;  %5069 = vmatmul.mubr.msk.bf16.gmra.mrb[8].mxu0 %vm406_vm2, %v5595_v18 }
 0x118   : > { %4918 = vmatprep.mubr.msk.bf16.mxu1 %vm406_vm2, %v5596_v19  ;;  %5072 = vmatprep.mubr.msk.bf16.mxu0 %vm406_vm2, %v5597_v20 }
 0x11f   : > { %4919 = vmatmul.mubr.msk.bf16.gmra.mrb[28].mxu1 %vm406_vm2, %v5598_v21  ;;  %5073 = vmatmul.mubr.msk.bf16.gmra.mrb[12].mxu0 %vm406_vm2, %v5599_v22 }
 0x120   : > { %4940 = vmatprep.mubr.msk.bf16.mxu1 %vm406_vm2, %v5600_v23  ;;  %5076 = vmatprep.mubr.msk.bf16.mxu0 %vm406_vm2, %v5601_v24 }
 0x127   : > { %4941 = vmatmul.mubr.msk.bf16.vlgmr.msra.gmra.mrb[16].mxu1 %vm406_vm2, %v5602_v25  ;;  %5077 = vmatmul.mubr.msk.bf16.gmra.mrb[16].mxu0 %vm406_vm2, %v5603_v26 }
 0x128   : > { %4944 = vmatprep.mubr.msk.bf16.mxu1 %vm406_vm2, %v5604_v27  ;;  %5080 = vmatprep.mubr.msk.bf16.mxu0 %vm406_vm2, %v5605_v28 }
 0x12f   : > { %4945 = vmatmul.mubr.msk.bf16.gmra.mrb[20].mxu1 %vm406_vm2, %v5606_v29  ;;  %5081 = vmatmul.mubr.msk.bf16.gmra.mrb[20].mxu0 %vm406_vm2, %v5607_v30 }
 0x130   : > { %4948 = vmatprep.mubr.msk.bf16.mxu1 %vm406_vm2, %v5608_v31  ;;  %5084 = vmatprep.mubr.msk.bf16.mxu0 %vm406_vm2, %v5609_v32 }
 0x137   : > { %4949 = vmatmul.mubr.msk.bf16.gmra.mrb[24].mxu1 %vm406_vm2, %v5610_v33  ;;  %5085 = vmatmul.mubr.msk.bf16.gmra.mrb[24].mxu0 %vm406_vm2, %v5611_v34 }
 0x138   : > { %4952 = vmatprep.mubr.msk.bf16.mxu1 %vm406_vm2, %v5612_v35  ;;  %5088 = vmatprep.mubr.msk.bf16.mxu0 %vm406_vm2, %v5613_v36 }
 0x13f   : > { %4953 = vmatmul.mubr.msk.bf16.gmra.mrb[28].mxu1 %vm406_vm2, %v5614_v37  ;;  %5089 = vmatmul.mubr.msk.bf16.gmra.mrb[28].mxu0 %vm406_vm2, %v5615_v38 }
 0x1ba   : > { %v4892_v39 = vpop.f32.mrb[0].mxu1 }
 0x1bb   : > { %v1698_v40 = vpop.f32.mrb[1].mxu1 }
 0x1bc   : > { %v4893_v41 = vpop.f32.mrb[2].mxu1 }
 0x1bd   : > { %v1701_v42 = vpop.f32.mrb[3].mxu1 }
 0x1c2   : > { %v4896_v43 = vpop.f32.mrb[4].mxu1 }
 0x1c3   : > { %v1714_v44 = vpop.f32.mrb[5].mxu1 }
 0x1c4   : > { %v4897_v45 = vpop.f32.mrb[6].mxu1 }
 0x1c5   : > { %v1717_v46 = vpop.f32.mrb[7].mxu1 }
 0x1ca   : > { %v4900_v47 = vpop.f32.mrb[8].mxu1 }
 0x1cb   : > { %v1730_v48 = vpop.f32.mrb[9].mxu1 }
 0x1cc   : > { %v4901_v49 = vpop.f32.mrb[10].mxu1 }
 0x1cd   : > { %v1733_v50 = vpop.f32.mrb[11].mxu1 }
 0x1d2   : > { %v6191_v51 = vpop.f32.mrb[12].mxu1 }
 0x1d3   : > { %v6193_v52 = vpop.f32.mrb[13].mxu1 }
 0x1d4   : > { %v6195_v53 = vpop.f32.mrb[14].mxu1 }
 0x1d5   : > { %v6197_v54 = vpop.f32.mrb[15].mxu1 }
 0x1da   : > { %v5062_v55 = vpop.f32.mrb[0].mxu0 }
 0x1db   : > { %v5096_v56 = vadd.f32 %v5062_v55, %v4892_v39  ;;  %v3808_v57 = vpop.f32.mrb[1].mxu0 }
 0x1dc   : > { %v5099_v58 = vadd.f32 %v3808_v57, %v1698_v40  ;;  %v5063_v59 = vpop.f32.mrb[2].mxu0 }
 0x1dd   : > { %4001 = vst [vmem:[%s5848_s28 + $0x10] sm:$0xff] %v5096_v56  ;;  %v5102_v60 = vadd.f32 %v5063_v59, %v4893_v41  ;;  %v3811_v61 = vpop.f32.mrb[3].mxu0  ;;  %v4106_v1 = vmul.f32 %v5096_v56, %v5096_v56 }
 0x1de   : > { %3999 = vst [vmem:[%s5848_s28] sm:$0xff] %v5099_v58  ;;  %v5105_v62 = vadd.f32 %v3811_v61, %v1701_v42  ;;  %v4104_v63 = vmul.f32 %v5099_v58, %v5099_v58 }
 0x1df   : > { %4002 = vst [vmem:[%s5848_s28 + $0x18] sm:$0xff] %v5102_v60  ;;  %v4107_v8 = vmul.f32 %v5102_v60, %v5102_v60 }
 0x1e0   : > { %4000 = vst [vmem:[%s5848_s28 + $0x8] sm:$0xff] %v5105_v62  ;;  %v4064_v0 = vadd.f32 %v5105_v62, %v5099_v58  ;;  %v4105_v9 = vmul.f32 %v5105_v62, %v5105_v62 }
 0x1e2   : > { %v4065_v2 = vadd.f32 %v5096_v56, %v4064_v0  ;;  %v4136_v3 = vadd.f32 %v4105_v9, %v4104_v63  ;;  %v5066_v4 = vpop.f32.mrb[4].mxu0 }
 0x1e3   : > { %v5108_v5 = vadd.f32 %v5066_v4, %v4896_v43  ;;  %v3824_v7 = vpop.f32.mrb[5].mxu0 }
 0x1e4   : > { %v4137_v10 = vadd.f32 %v4136_v3, %v4106_v1  ;;  %v5111_v11 = vadd.f32 %v3824_v7, %v1714_v44  ;;  %v4066_v12 = vadd.f32 %v5102_v60, %v4065_v2  ;;  %v5067_v13 = vpop.f32.mrb[6].mxu0 }
 0x1e5   : > { %4005 = vst [vmem:[%s5848_s28 + $0x30] sm:$0xff] %v5108_v5  ;;  %v5114_v14 = vadd.f32 %v5067_v13, %v4897_v45  ;;  %v3827_v15 = vpop.f32.mrb[7].mxu0  ;;  %v4110_v22 = vmul.f32 %v5108_v5, %v5108_v5 }
 0x1e6   : > { %4003 = vst [vmem:[%s5848_s28 + $0x20] sm:$0xff] %v5111_v11  ;;  %v4067_v6 = vadd.f32 %v5111_v11, %v4066_v12  ;;  %v4108_v16 = vmul.f32 %v5111_v11, %v5111_v11  ;;  %v4138_v17 = vadd.f32 %v4137_v10, %v4107_v8  ;;  %v5117_v18 = vadd.f32 %v3827_v15, %v1717_v46 }
 0x1e7   : > { %4006 = vst [vmem:[%s5848_s28 + $0x38] sm:$0xff] %v5114_v14  ;;  %v4111_v28 = vmul.f32 %v5114_v14, %v5114_v14 }
 0x1e8   : > { %v4139_v19 = vadd.f32 %v4138_v17, %v4108_v16  ;;  %4004 = vst [vmem:[%s5848_s28 + $0x28] sm:$0xff] %v5117_v18  ;;  %v4068_v20 = vadd.f32 %v5117_v18, %v4067_v6  ;;  %v4109_v21 = vmul.f32 %v5117_v18, %v5117_v18 }
 0x1ea   : > { %v4069_v23 = vadd.f32 %v5108_v5, %v4068_v20  ;;  %v4140_v24 = vadd.f32 %v4139_v19, %v4109_v21  ;;  %v5070_v25 = vpop.f32.mrb[8].mxu0 }
 0x1eb   : > { %v5120_v26 = vadd.f32 %v5070_v25, %v4900_v47  ;;  %v3840_v27 = vpop.f32.mrb[9].mxu0 }
 0x1ec   : > { %v4141_v29 = vadd.f32 %v4140_v24, %v4110_v22  ;;  %v5123_v30 = vadd.f32 %v3840_v27, %v1730_v48  ;;  %v4070_v31 = vadd.f32 %v5114_v14, %v4069_v23  ;;  %v5071_v32 = vpop.f32.mrb[10].mxu0 }
 0x1ed   : > { %4009 = vst [vmem:[%s5848_s28 + $0x50] sm:$0xff] %v5120_v26  ;;  %v5126_v33 = vadd.f32 %v5071_v32, %v4901_v49  ;;  %v3843_v34 = vpop.f32.mrb[11].mxu0  ;;  %v4114_v42 = vmul.f32 %v5120_v26, %v5120_v26 }
 0x1ee   : > { %4007 = vst [vmem:[%s5848_s28 + $0x40] sm:$0xff] %v5123_v30  ;;  %v4071_v35 = vadd.f32 %v5123_v30, %v4070_v31  ;;  %v4112_v36 = vmul.f32 %v5123_v30, %v5123_v30  ;;  %v4142_v37 = vadd.f32 %v4141_v29, %v4111_v28  ;;  %v5129_v38 = vadd.f32 %v3843_v34, %v1733_v50 }
 0x1ef   : > { %4010 = vst [vmem:[%s5848_s28 + $0x58] sm:$0xff] %v5126_v33  ;;  %v4115_v48 = vmul.f32 %v5126_v33, %v5126_v33 }
 0x1f0   : > { %v4143_v39 = vadd.f32 %v4142_v37, %v4112_v36  ;;  %4008 = vst [vmem:[%s5848_s28 + $0x48] sm:$0xff] %v5129_v38  ;;  %v4072_v40 = vadd.f32 %v5129_v38, %v4071_v35  ;;  %v4113_v41 = vmul.f32 %v5129_v38, %v5129_v38 }
 0x1f2   : > { %v4073_v43 = vadd.f32 %v5120_v26, %v4072_v40  ;;  %v4144_v44 = vadd.f32 %v4143_v39, %v4113_v41  ;;  %v5074_v45 = vpop.f32.mrb[12].mxu0 }
 0x1f3   : > { %v5132_v46 = vadd.f32 %v5074_v45, %v6191_v51  ;;  %v3856_v47 = vpop.f32.mrb[13].mxu0 }
 0x1f4   : > { %v4145_v49 = vadd.f32 %v4144_v44, %v4114_v42  ;;  %v5135_v50 = vadd.f32 %v3856_v47, %v6193_v52  ;;  %v4074_v55 = vadd.f32 %v5126_v33, %v4073_v43  ;;  %v5075_v56 = vpop.f32.mrb[14].mxu0 }
 0x1f5   : > { %4013 = vst [vmem:[%s5848_s28 + $0x70] sm:$0xff] %v5132_v46  ;;  %v5138_v57 = vadd.f32 %v5075_v56, %v6195_v53  ;;  %v3859_v58 = vpop.f32.mrb[15].mxu0  ;;  %v4118_v9 = vmul.f32 %v5132_v46, %v5132_v46 }
 0x1f6   : > { %4011 = vst [vmem:[%s5848_s28 + $0x60] sm:$0xff] %v5135_v50  ;;  %v4075_v59 = vadd.f32 %v5135_v50, %v4074_v55  ;;  %v4116_v60 = vmul.f32 %v5135_v50, %v5135_v50  ;;  %v4146_v61 = vadd.f32 %v4145_v49, %v4115_v48  ;;  %v5141_v62 = vadd.f32 %v3859_v58, %v6197_v54 }
 0x1f7   : > { %4014 = vst [vmem:[%s5848_s28 + $0x78] sm:$0xff] %v5138_v57  ;;  %v4119_v7 = vmul.f32 %v5138_v57, %v5138_v57 }
 0x1f8   : > { %v4147_v51 = vadd.f32 %v4146_v61, %v4116_v60  ;;  %4012 = vst [vmem:[%s5848_s28 + $0x68] sm:$0xff] %v5141_v62  ;;  %v4076_v63 = vadd.f32 %v5141_v62, %v4075_v59  ;;  %v4117_v0 = vmul.f32 %v5141_v62, %v5141_v62 }
 0x1fa   : > { %v4077_v52 = vadd.f32 %v5132_v46, %v4076_v63  ;;  %v4148_v1 = vadd.f32 %v4147_v51, %v4117_v0  ;;  %v4942_v2 = vpop.f32.mrb[16].mxu1  ;;  %v5078_v3 = vpop.f32.mrb[16].mxu0 }
 0x1fb   : > { %v5144_v53 = vadd.f32 %v5078_v3, %v4942_v2  ;;  %v2184_v4 = vpop.f32.mrb[17].mxu1  ;;  %v3872_v5 = vpop.f32.mrb[17].mxu0 }
 0x1fc   : > { %v4149_v8 = vadd.f32 %v4148_v1, %v4118_v9  ;;  %v5147_v54 = vadd.f32 %v3872_v5, %v2184_v4  ;;  %v4078_v10 = vadd.f32 %v5138_v57, %v4077_v52  ;;  %v4943_v11 = vpop.f32.mrb[18].mxu1  ;;  %v5079_v12 = vpop.f32.mrb[18].mxu0 }
 0x1fd   : > { %4017 = vst [vmem:[%s5848_s28 + $0x90] sm:$0xff] %v5144_v53  ;;  %v5150_v13 = vadd.f32 %v5079_v12, %v4943_v11  ;;  %v2187_v14 = vpop.f32.mrb[19].mxu1  ;;  %v3875_v15 = vpop.f32.mrb[19].mxu0  ;;  %v4122_v22 = vmul.f32 %v5144_v53, %v5144_v53 }
 0x1fe   : > { %4015 = vst [vmem:[%s5848_s28 + $0x80] sm:$0xff] %v5147_v54  ;;  %v4079_v6 = vadd.f32 %v5147_v54, %v4078_v10  ;;  %v4120_v16 = vmul.f32 %v5147_v54, %v5147_v54  ;;  %v4150_v17 = vadd.f32 %v4149_v8, %v4119_v7  ;;  %v5153_v18 = vadd.f32 %v3875_v15, %v2187_v14 }
 0x1ff   : > { %4018 = vst [vmem:[%s5848_s28 + $0x98] sm:$0xff] %v5150_v13  ;;  %v4123_v34 = vmul.f32 %v5150_v13, %v5150_v13 }
 0x200   : > { %v4151_v19 = vadd.f32 %v4150_v17, %v4120_v16  ;;  %4016 = vst [vmem:[%s5848_s28 + $0x88] sm:$0xff] %v5153_v18  ;;  %v4080_v20 = vadd.f32 %v5153_v18, %v4079_v6  ;;  %v4121_v21 = vmul.f32 %v5153_v18, %v5153_v18 }
 0x202   : > { %v4152_v23 = vadd.f32 %v4151_v19, %v4121_v21  ;;  %v4946_v24 = vpop.f32.mrb[20].mxu1  ;;  %v5082_v25 = vpop.f32.mrb[20].mxu0  ;;  %v4081_v26 = vadd.f32 %v5144_v53, %v4080_v20 }
 0x203   : > { %v5156_v27 = vadd.f32 %v5082_v25, %v4946_v24  ;;  %v2200_v28 = vpop.f32.mrb[21].mxu1  ;;  %v3888_v29 = vpop.f32.mrb[21].mxu0 }
 0x204   : > { %v5159_v30 = vadd.f32 %v3888_v29, %v2200_v28  ;;  %v4947_v31 = vpop.f32.mrb[22].mxu1  ;;  %v5083_v32 = vpop.f32.mrb[22].mxu0  ;;  %v4082_v33 = vadd.f32 %v5150_v13, %v4081_v26  ;;  %v4153_v35 = vadd.f32 %v4152_v23, %v4122_v22 }
 0x205   : > { %4021 = vst [vmem:[%s5848_s28 + $0xb0] sm:$0xff] %v5156_v27  ;;  %v5162_v36 = vadd.f32 %v5083_v32, %v4947_v31  ;;  %v2203_v37 = vpop.f32.mrb[23].mxu1  ;;  %v3891_v38 = vpop.f32.mrb[23].mxu0  ;;  %v4126_v49 = vmul.f32 %v5156_v27, %v5156_v27 }
 0x206   : > { %4019 = vst [vmem:[%s5848_s28 + $0xa0] sm:$0xff] %v5159_v30  ;;  %v5165_v39 = vadd.f32 %v3891_v38, %v2203_v37  ;;  %v4083_v40 = vadd.f32 %v5159_v30, %v4082_v33  ;;  %v4124_v41 = vmul.f32 %v5159_v30, %v5159_v30  ;;  %v4154_v42 = vadd.f32 %v4153_v35, %v4123_v34 }
 0x207   : > { %4022 = vst [vmem:[%s5848_s28 + $0xb8] sm:$0xff] %v5162_v36  ;;  %v4127_v62 = vmul.f32 %v5162_v36, %v5162_v36 }
 0x208   : > { %4020 = vst [vmem:[%s5848_s28 + $0xa8] sm:$0xff] %v5165_v39  ;;  %v4084_v43 = vadd.f32 %v5165_v39, %v4083_v40  ;;  %v4125_v44 = vmul.f32 %v5165_v39, %v5165_v39  ;;  %v4155_v45 = vadd.f32 %v4154_v42, %v4124_v41 }
 0x20a   : > { %v4950_v46 = vpop.f32.mrb[24].mxu1  ;;  %v5086_v47 = vpop.f32.mrb[24].mxu0  ;;  %v4085_v48 = vadd.f32 %v5156_v27, %v4084_v43  ;;  %v4156_v50 = vadd.f32 %v4155_v45, %v4125_v44 }
 0x20b   : > { %v5168_v55 = vadd.f32 %v5086_v47, %v4950_v46  ;;  %v2216_v56 = vpop.f32.mrb[25].mxu1  ;;  %v3904_v57 = vpop.f32.mrb[25].mxu0 }
 0x20c   : > { %v5171_v58 = vadd.f32 %v3904_v57, %v2216_v56  ;;  %v4951_v59 = vpop.f32.mrb[26].mxu1  ;;  %v5087_v60 = vpop.f32.mrb[26].mxu0  ;;  %v4086_v61 = vadd.f32 %v5162_v36, %v4085_v48  ;;  %v4157_v51 = vadd.f32 %v4156_v50, %v4126_v49 }
 0x20d   : > { %4025 = vst [vmem:[%s5848_s28 + $0xd0] sm:$0xff] %v5168_v55  ;;  %v5174_v63 = vadd.f32 %v5087_v60, %v4951_v59  ;;  %v2219_v0 = vpop.f32.mrb[27].mxu1  ;;  %v3907_v9 = vpop.f32.mrb[27].mxu0  ;;  %v4130_v10 = vmul.f32 %v5168_v55, %v5168_v55 }
 0x20e   : > { %4023 = vst [vmem:[%s5848_s28 + $0xc0] sm:$0xff] %v5171_v58  ;;  %v5177_v52 = vadd.f32 %v3907_v9, %v2219_v0  ;;  %v4087_v1 = vadd.f32 %v5171_v58, %v4086_v61  ;;  %v4128_v2 = vmul.f32 %v5171_v58, %v5171_v58  ;;  %v4158_v3 = vadd.f32 %v4157_v51, %v4127_v62 }
 0x20f   : > { %4026 = vst [vmem:[%s5848_s28 + $0xd8] sm:$0xff] %v5174_v63  ;;  %v4131_v18 = vmul.f32 %v5174_v63, %v5174_v63 }
 0x210   : > { %4024 = vst [vmem:[%s5848_s28 + $0xc8] sm:$0xff] %v5177_v52  ;;  %v4088_v53 = vadd.f32 %v5177_v52, %v4087_v1  ;;  %v4129_v4 = vmul.f32 %v5177_v52, %v5177_v52  ;;  %v4159_v5 = vadd.f32 %v4158_v3, %v4128_v2 }
 0x212   : > { %v4954_v7 = vpop.f32.mrb[28].mxu1  ;;  %v5090_v8 = vpop.f32.mrb[28].mxu0  ;;  %v4089_v54 = vadd.f32 %v5168_v55, %v4088_v53  ;;  %v4160_v11 = vadd.f32 %v4159_v5, %v4129_v4 }
 0x213   : > { %v5180_v12 = vadd.f32 %v5090_v8, %v4954_v7  ;;  %v2232_v13 = vpop.f32.mrb[29].mxu1  ;;  %v3920_v14 = vpop.f32.mrb[29].mxu0 }
 0x214   : > { %v5183_v15 = vadd.f32 %v3920_v14, %v2232_v13  ;;  %v4955_v6 = vpop.f32.mrb[30].mxu1  ;;  %v5091_v16 = vpop.f32.mrb[30].mxu0  ;;  %v4090_v17 = vadd.f32 %v5174_v63, %v4089_v54  ;;  %v4161_v19 = vadd.f32 %v4160_v11, %v4130_v10 }
 0x215   : > { %4029 = vst [vmem:[%s5848_s28 + $0xf0] sm:$0xff] %v5180_v12  ;;  %v5186_v20 = vadd.f32 %v5091_v16, %v4955_v6  ;;  %v2235_v21 = vpop.f32.mrb[31].mxu1  ;;  %v3923_v22 = vpop.f32.mrb[31].mxu0 }
 0x216   : > { %4027 = vst [vmem:[%s5848_s28 + $0xe0] sm:$0xff] %v5183_v15  ;;  %v5189_v23 = vadd.f32 %v3923_v22, %v2235_v21  ;;  %v4091_v24 = vadd.f32 %v5183_v15, %v4090_v17  ;;  %v4132_v25 = vmul.f32 %v5183_v15, %v5183_v15  ;;  %v4162_v26 = vadd.f32 %v4161_v19, %v4131_v18 }
 0x217   : > { %4030 = vst [vmem:[%s5848_s28 + $0xf8] sm:$0xff] %v5186_v20 }
 0x218   : > { %4028 = vst [vmem:[%s5848_s28 + $0xe8] sm:$0xff] %v5189_v23  ;;  %v4092_v27 = vadd.f32 %v5189_v23, %v4091_v24  ;;  %v4133_v28 = vmul.f32 %v5189_v23, %v5189_v23  ;;  %v4163_v29 = vadd.f32 %v4162_v26, %v4132_v25 }
 0x219   : > { %5629 = shalt.err (!%p5626_p7)
}
 0x21a   : > { %s5630_s9 = scalar_lea.hbm %s6237_s20, 4096  ;;  %s5634_s16 = scalar_lea.hbm %s6339_s4, 8192 }
 0x21b   : > { %p5631_p8 = scmp.ne.s32.totalorder %s6237_s20, %s5630_s9  ;;  %p5635_p11 = scmp.lt.u32.totalorder %s6237_s20, %s6339_s4 }
 0x21c   : > { %p5636_p12 = scmp.lt.u32.totalorder %s5634_s16, %s5630_s9  ;;  %p5638_p0 = scmp.lt.u32.totalorder %s5630_s9, %s6237_s20 }
 0x21d   : > { %p5632_p9 = pnand %p5631_p8, %p5818_p5 }
 0x21e   : > { %p5637_p13 = por %p5636_p12, %p5635_p11 }
 0x21f   : > { %p5633_p10 = pneg %p5632_p9 }
 0x220   : > { %p5639_p1 = por %p5638_p0, %p5637_p13 }
 0x222   : > { %p5640_p3 = pnand %p5639_p1, %p5633_p10 }
 0x224   : > { %5643 = shalt.err (!%p5640_p3)
}
 0x225   : > { %s5739_s26 = smov 128   ;;  %s5740_s19 = smov 8   ;;  %v4093_v30 = vadd.f32 %v5180_v12, %v4092_v27  ;;  %v4134_v31 = vmul.f32 %v5180_v12, %v5180_v12  ;;  %v4164_v32 = vadd.f32 %v4163_v29, %v4133_v28  ;;  %v4135_v34 = vmul.f32 %v5186_v20, %v5186_v20  ;;  %v4063_v46 = vld [vmem:[#allocation4] sm:$0x1]  ;;  %v4103_v49 = vld [vmem:[#allocation6] sm:$0x1] }
 0x226   : > { %5415 = dma.vmem_to_hbm [thread:$0]  (%p5818_p5), %s6239_s18, 4096, %s6237_s20, %s6246_s29, %s5739_s26, %s5739_s26, %s5740_s19  }
 0x227   : > { %v4094_v33 = vadd.f32 %v5186_v20, %v4093_v30  ;;  %v4165_v35 = vadd.f32 %v4164_v32, %v4134_v31  ;;  %s5741_s7 = smov [#allocation4]   ;;  %s5742_s20 = smov [#allocation6]  }
 0x228   : > { %s4203_s18 = sshll.u32 %s5741_s7, 4  ;;  %s4214_s29 = sshll.u32 %s5742_s20, 4  ;;  %s4204_s18 = int_to_ptr.vmem [resolvable:$true] %s4203_s18  ;;  %s6270_s29 = int_to_ptr.vmem [resolvable:$true] %s4214_s29 }
 0x229   : > { %v4095_v36 = vrot.slane %v4094_v33, 4  ;;  %v4166_v37 = vadd.f32 %v4165_v35, %v4135_v34  ;;  %s5644_s11 = scalar_lea.vmem %s4204_s18, 16  ;;  %s5650_s10 = scalar_lea.vmem %s4204_s18, 32 }
 0x22a   : > { %p5645_p5 = scmp.ne.s32.totalorder %s4204_s18, %s5644_s11  ;;  %p5651_p8 = scmp.lt.s32.totalorder %s4204_s18, %s4204_s18 }
 0x22b   : > { %v4096_v38 = vadd.f32 %v4095_v36, %v4094_v33  ;;  %v4167_v39 = vrot.slane %v4166_v37, 4  ;;  %p5652_p9 = scmp.lt.s32.totalorder %s5650_s10, %s5644_s11 }
 0x22c   : > { %p5646_p4 = pnand %p5645_p5, %p138_p2 }
 0x22d   : > { %v4097_v40 = vrot.slane %v4096_v38, 2  ;;  %v4168_v41 = vadd.f32 %v4167_v39, %v4166_v37  ;;  %p5653_p10 = por %p5652_p9, %p5651_p8 }
 0x22e   : > { %p5647_p7 = pneg %p5646_p4 }
 0x22f   : > { %v4098_v42 = vadd.f32 %v4097_v40, %v4096_v38  ;;  %v4169_v43 = vrot.slane %v4168_v41, 2 }
 0x230   : > { %p5654_p11 = pnand %p5653_p10, %p5647_p7 }
 0x231   : > { %v4099_v44 = vrot.slane %v4098_v42, 1  ;;  %v4170_v45 = vadd.f32 %v4169_v43, %v4168_v41 }
 0x233   : > { %v4100_v47 = vadd.f32 %v4099_v44, %v4098_v42  ;;  %v4171_v48 = vrot.slane %v4170_v45, 1 }
 0x235   : > { %v4101_v50 = vadd.f32 %v4100_v47, %v4063_v46  ;;  %v4172_v55 = vadd.f32 %v4171_v48, %v4170_v45 }
 0x237   : > { %4102 = vst [vmem:[#allocation4] sm:$0x1] %v4101_v50  ;;  %v4173_v56 = vadd.f32 %v4172_v55, %v4103_v49 }
 0x238   : > { %5657 = shalt.err (!%p5654_p11)
}
 0x239   : > { %s5658_s9 = scalar_lea.hbm %s6340_s5, 16 }
 0x23a   : > { %p5659_p12 = scmp.ne.s32.totalorder %s6340_s5, %s5658_s9  ;;  %p5664_p1 = scmp.lt.u32.totalorder %s5658_s9, %s6340_s5 }
 0x23c   : > { %p5660_p13 = pnand %p5659_p12, %p138_p2 }
 0x23e   : > { %p5661_p0 = pneg %p5660_p13 }
 0x240   : > { %p5666_p3 = pnand %p5664_p1, %p5661_p0 }
 0x242   : > { %5669 = shalt.err (!%p5666_p3)
}
 0x243   : > { %5417 = dma.vmem_to_hbm [thread:$0]  (%p138_p2), %s4204_s18, 16, %s6340_s5, [#allocation5]   ;;  %4174 = vst [vmem:[#allocation6] sm:$0x1] %v4173_v56 }
 0x244   : > { %s5670_s19 = scalar_lea.vmem %s6270_s29, 16  ;;  %s5676_s7 = scalar_lea.vmem %s6270_s29, 32 }
 0x245   : > { %p5671_p5 = scmp.ne.s32.totalorder %s6270_s29, %s5670_s19  ;;  %p5677_p8 = scmp.lt.s32.totalorder %s6270_s29, %s6270_s29 }
 0x246   : > { %p5678_p9 = scmp.lt.s32.totalorder %s5676_s7, %s5670_s19 }
 0x247   : > { %p5672_p4 = pnand %p5671_p5, %p138_p2 }
 0x248   : > { %p5679_p10 = por %p5678_p9, %p5677_p8 }
 0x249   : > { %p5673_p7 = pneg %p5672_p4 }
 0x24b   : > { %p5680_p11 = pnand %p5679_p10, %p5673_p7 }
 0x24d   : > { %5683 = shalt.err (!%p5680_p11)
}
 0x24e   : > { %s5684_s10 = scalar_lea.hbm %s6341_s6, 16 }
 0x24f   : > { %p5685_p12 = scmp.ne.s32.totalorder %s6341_s6, %s5684_s10  ;;  %p5690_p1 = scmp.lt.u32.totalorder %s5684_s10, %s6341_s6 }
 0x251   : > { %p5686_p13 = pnand %p5685_p12, %p138_p2 }
 0x253   : > { %p5687_p0 = pneg %p5686_p13 }
 0x255   : > { %p5692_p3 = pnand %p5690_p1, %p5687_p0 }
 0x257   : > { %5695 = shalt.err (!%p5692_p3)
}
 0x258   : > { %5419 = dma.vmem_to_hbm [thread:$0]  (%p138_p2), %s6270_s29, 16, %s6341_s6, [#allocation5]  }
 0x259   : > { %5713 = dma.done.wait (%p138_p2), [#allocation5], 32  }
 0x25a   : > { %5715 = vsyncadd (%p138_p2), [#allocation5], 4294967264 }
 0x25b PF: > { %p5433_p5 = scmp.ge.s32.totalorder %s5734_s24, 2  ;;  %s4234_s16 = sand.u32 1, %s5722_s21  }
 0x25c   : > { %s4235_s17 = scalar_lea.sflag [#allocation3], %s4234_s16 }
 0x25d   : > { %p5426_p4 = pnand %p5433_p5, %p5822_p6 }
 0x25f   : > { %5717 = dma.done.wait (!%p5426_p4), %s4235_s17, 4096  }
 0x260   : > { %5719 = vsyncadd (!%p5426_p4), %s4235_s17, 4294963200  ;;  %p18_p7 = scmp.ge.s32.totalorder %s5803_s27, 4   ;;  %s6344_s21 = smov %s5726_s22 }
 0x261   : > { %s6345_s22 = smov %s5730_s23  ;;  %s6346_s23 = smov %s5814_s30 }
 0x262   : > { %s6347_s24 = smov %s5803_s27  ;;  %20 = sbr.rel (!%p18_p7) target bundleno = 4 (0x4), region = 105 }
 0x269   :  { %4240 = vsyncpa [#allocation3], 1 }
 0x26a   :  { %4242 = vsyncpa [#allocation3 + $0x1], 1 }
 0x26b   :  { %4243 = vsyncpa [#allocation5], 1 }

</bundles_post_ra>
